<compile_context>
chip_gen: v7x
topology: tpu7x:2x2x1
jax: 0.10.0
libtpu: 0.0.40
codegen_flags: <defaults>
</compile_context>

<pallas_src>
import functools
import math

import jax
import jax.numpy as jnp
from jax.experimental import pallas as pl
from jax.experimental.pallas import tpu as pltpu


def _round_up(x, m):
    return ((x + m - 1) // m) * m


def _pad2d(x, rows, cols):
    return jnp.pad(x, ((0, rows - x.shape[0]), (0, cols - x.shape[1])))


# ------------------------------------------------------------------ fused HGIN kernel
def _hgin_fused_kernel(
    eps_ref,                                    # SMEM (2,): [eps_go, eps_return]
    h_spot_ref, h_other_ref,                    # VMEM (NSP, FIN), (NOP, FIN)
    adj_go_ref, adj_ret_ref,                    # VMEM (NOP, NSP), (NSP, NOP)
    go_w1_ref, go_b1_ref, go_g_ref, go_be_ref, go_w2_ref, go_b2_ref,
    p_w_ref, p_b_ref,
    rt_w1_ref, rt_b1_ref, rt_g_ref, rt_be_ref, rt_w2_ref, rt_b2_ref,
    out_spot_ref, out_other_ref,                # VMEM (NSP, FOUT), (NOP, FOUT)
    *, n_spot, n_other,
):
    def gin_mlp2(h, a, eps, w1, b1, g, be, w2, b2, n_valid):
        # (1 + eps) * h + a, then Linear -> BN(train, masked stats) -> ReLU -> Linear.
        x = (1.0 + eps) * h + a
        z = jnp.dot(x, w1, preferred_element_type=jnp.float32) + b1
        row = jax.lax.broadcasted_iota(jnp.int32, z.shape, 0)
        mask = (row < n_valid).astype(jnp.float32)      # exclude padded rows from stats
        inv_n = 1.0 / float(n_valid)
        mean = jnp.sum(z * mask, axis=0, keepdims=True) * inv_n
        d = (z - mean) * mask
        var = jnp.sum(d * d, axis=0, keepdims=True) * inv_n   # biased variance (train)
        zn = (z - mean) * jax.lax.rsqrt(var + 1e-5) * g + be
        h1 = jnp.maximum(zn, 0.0)
        return jnp.dot(h1, w2, preferred_element_type=jnp.float32) + b2

    eps_go = eps_ref[0]
    eps_rt = eps_ref[1]
    h_spot = h_spot_ref[...]

    # --- go path: aggregate spot -> other (a = adj_go @ h_spot), GIN update of 'other'.
    a_other = jnp.dot(adj_go_ref[...], h_spot, preferred_element_type=jnp.float32)
    h_other_new = gin_mlp2(
        h_other_ref[...], a_other, eps_go,
        go_w1_ref[...], go_b1_ref[...], go_g_ref[...], go_be_ref[...],
        go_w2_ref[...], go_b2_ref[...], n_other)
    out_other_ref[...] = h_other_new

    # --- return path: aggregate updated 'other' -> target 'spot'.
    a_spot = jnp.dot(adj_ret_ref[...], h_other_new, preferred_element_type=jnp.float32)

    # --- target update: h = project(h_spot); h = MLP['Return']((1+eps)*h + a).
    h_proj = jnp.dot(h_spot, p_w_ref[...], preferred_element_type=jnp.float32) + p_b_ref[...]
    out_spot_ref[...] = gin_mlp2(
        h_proj, a_spot, eps_rt,
        rt_w1_ref[...], rt_b1_ref[...], rt_g_ref[...], rt_be_ref[...],
        rt_w2_ref[...], rt_b2_ref[...], n_spot)


# ----------------------------------------------------------------------- JAX wrapper
def hgin_forward(params, feat_dict, adj_go, adj_ret):
    """adj_go[other, spot] : edges of go_path   (spot -> other)
       adj_ret[spot, other]: edges of return_path (other -> spot)"""
    h_spot = feat_dict["spot"].astype(jnp.float32)
    h_other = feat_dict["other"].astype(jnp.float32)
    n_spot, in_size = h_spot.shape
    n_other = h_other.shape[0]
    out_size = params["proj"][0].shape[1]

    # Lane-dense padded extents (all matmul operands become full (8,128)-tiled slabs).
    NSP = _round_up(n_spot, 128)
    NOP = _round_up(n_other, 128)
    FIN = _round_up(in_size, 128)
    FH = _round_up(out_size, 128)      # hidden size == out_size in this module
    FOUT = _round_up(out_size, 128)

    gw1, gb1, gg, gbe, gw2, gb2 = params["mlp_go"]
    rw1, rb1, rg, rbe, rw2, rb2 = params["mlp_ret"]
    pw, pb = params["proj"]

    args = (
        jnp.stack([params["eps_go"], params["eps_ret"]]).astype(jnp.float32),  # SMEM
        _pad2d(h_spot, NSP, FIN), _pad2d(h_other, NOP, FIN),
        _pad2d(adj_go.astype(jnp.float32), NOP, NSP),
        _pad2d(adj_ret.astype(jnp.float32), NSP, NOP),
        _pad2d(gw1, FIN, FH), _pad2d(gb1, 1, FH), _pad2d(gg, 1, FH),
        _pad2d(gbe, 1, FH), _pad2d(gw2, FH, FOUT), _pad2d(gb2, 1, FOUT),
        _pad2d(pw, FIN, FOUT), _pad2d(pb, 1, FOUT),
        _pad2d(rw1, FOUT, FH), _pad2d(rb1, 1, FH), _pad2d(rg, 1, FH),
        _pad2d(rbe, 1, FH), _pad2d(rw2, FH, FOUT), _pad2d(rb2, 1, FOUT),
    )

    vmem = pl.BlockSpec(memory_space=pltpu.MemorySpace.VMEM)
    smem = pl.BlockSpec(memory_space=pltpu.MemorySpace.SMEM)

    out_spot_p, out_other_p = pl.pallas_call(
        functools.partial(_hgin_fused_kernel, n_spot=n_spot, n_other=n_other),
        out_shape=(jax.ShapeDtypeStruct((NSP, FOUT), jnp.float32),
                   jax.ShapeDtypeStruct((NOP, FOUT), jnp.float32)),
        in_specs=[smem] + [vmem] * (len(args) - 1),
        out_specs=(vmem, vmem),
    )(*args)

    return {"spot": out_spot_p[:n_spot, :out_size],
            "other": out_other_p[:n_other, :out_size]}


# ------------------------------------------------------------------ parameter creation
def _linear_params(key, fan_in, fan_out):
    # torch.nn.Linear default init: U(-1/sqrt(fan_in), 1/sqrt(fan_in))
    k = 1.0 / math.sqrt(fan_in)
    kw, kb = jax.random.split(key)
    w = jax.random.uniform(kw, (fan_in, fan_out), jnp.float32, -k, k)
    b = jax.random.uniform(kb, (1, fan_out), jnp.float32, -k, k)
    return w, b


def _mlp2_params(key, in_size, hidden_size, out_size):
    k1, k2 = jax.random.split(key)
    w1, b1 = _linear_params(k1, in_size, hidden_size)
    gamma = jnp.ones((1, hidden_size), jnp.float32)   # BatchNorm1d weight
    beta = jnp.zeros((1, hidden_size), jnp.float32)   # BatchNorm1d bias
    w2, b2 = _linear_params(k2, hidden_size, out_size)
    return (w1, b1, gamma, beta, w2, b2)


def init_hgin_params(key, in_size, out_size):
    k_proj, k_go, k_ret = jax.random.split(key, 3)
    return {
        "proj": _linear_params(k_proj, in_size, out_size),             # self.project
        "mlp_go": _mlp2_params(k_go, in_size, out_size, out_size),     # self.MLP['go']
        "mlp_ret": _mlp2_params(k_ret, out_size, out_size, out_size),  # self.MLP['Return']
        "eps_go": jnp.zeros((), jnp.float32),                          # self.eps['go']
        "eps_ret": jnp.zeros((), jnp.float32),                         # self.eps['Return']
    }


# -------------------------------------------------------------------- pure-JAX reference
def _ref_forward(params, feat_dict, adj_go, adj_ret):
    hp = jax.lax.Precision.HIGHEST

    def mlp2(x, p):
        w1, b1, g, be, w2, b2 = p
        z = jnp.dot(x, w1, precision=hp) + b1
        mean = jnp.mean(z, axis=0, keepdims=True)
        var = jnp.mean((z - mean) ** 2, axis=0, keepdims=True)
        zn = (z - mean) * jax.lax.rsqrt(var + 1e-5) * g + be
        return jnp.dot(jnp.maximum(zn, 0.0), w2, precision=hp) + b2

    h_s, h_o = feat_dict["spot"], feat_dict["other"]
    a_o = jnp.dot(adj_go, h_s, precision=hp)
    h_o_new = mlp2((1.0 + params["eps_go"]) * h_o + a_o, params["mlp_go"])
    a_s = jnp.dot(adj_ret, h_o_new, precision=hp)
    pw, pb = params["proj"]
    h_s_proj = jnp.dot(h_s, pw, precision=hp) + pb
    h_s_new = mlp2((1.0 + params["eps_ret"]) * h_s_proj + a_s, params["mlp_ret"])
    return {"spot": h_s_new, "other": h_o_new}


# ------------------------------------------------------------------------------- main
if __name__ == "__main__":
    # TODO(synk): DGL's sparse heterograph send_and_recv/multi_update_all has no direct
    # Pallas equivalent; it is realized here as dense 0/1-adjacency matmuls.  For
    # realistic STitch3D graph sizes, replace with a tiled grid matmul (row axis
    # 'parallel', K axis 'arbitrary', BN stats still over ALL rows) or a CSR gather via
    # PrefetchScalarGridSpec, with tile budgets re-derived per generation (64 MiB VMEM
    # on v7x, 256-aligned bf16 tiles on v6e, 128-aligned f32 on v5e).
    key = jax.random.PRNGKey(0)
    k_feat_s, k_feat_o, k_adj_go, k_adj_ret, k_params = jax.random.split(key, 5)

    in_size, out_size = 32, 16
    n_spot, n_other = 24, 16

    feat_dict = {
        "spot": jax.random.normal(k_feat_s, (n_spot, in_size), jnp.float32),
        "other": jax.random.normal(k_feat_o, (n_other, in_size), jnp.float32),
    }
    adj_go = jax.random.bernoulli(k_adj_go, 0.3, (n_other, n_spot)).astype(jnp.float32)
    adj_ret = jax.random.bernoulli(k_adj_ret, 0.3, (n_spot, n_other)).astype(jnp.float32)

    params = init_hgin_params(k_params, in_size, out_size)

    out = jax.jit(hgin_forward)(params, feat_dict, adj_go, adj_ret)
    jax.block_until_ready(out)

    assert out["spot"].shape == (n_spot, out_size)
    assert out["other"].shape == (n_other, out_size)

    ref = _ref_forward(params, feat_dict, adj_go, adj_ret)
    assert bool(jnp.allclose(out["spot"], ref["spot"], rtol=2e-2, atol=2e-2))
    assert bool(jnp.allclose(out["other"], ref["other"], rtol=2e-2, atol=2e-2))
    print("KERNEL_OK")
</pallas_src>

<mosaic_0001>
module attributes {stable_mosaic.version = 11 : i64} {
  func.func @_hgin_fused_kernel(%arg0: memref<2xf32, #tpu.memory_space<smem>>, %arg1: memref<128x128xf32, #tpu.memory_space<vmem>>, %arg2: memref<128x128xf32, #tpu.memory_space<vmem>>, %arg3: memref<128x128xf32, #tpu.memory_space<vmem>>, %arg4: memref<128x128xf32, #tpu.memory_space<vmem>>, %arg5: memref<128x128xf32, #tpu.memory_space<vmem>>, %arg6: memref<1x128xf32, #tpu.memory_space<vmem>>, %arg7: memref<1x128xf32, #tpu.memory_space<vmem>>, %arg8: memref<1x128xf32, #tpu.memory_space<vmem>>, %arg9: memref<128x128xf32, #tpu.memory_space<vmem>>, %arg10: memref<1x128xf32, #tpu.memory_space<vmem>>, %arg11: memref<128x128xf32, #tpu.memory_space<vmem>>, %arg12: memref<1x128xf32, #tpu.memory_space<vmem>>, %arg13: memref<128x128xf32, #tpu.memory_space<vmem>>, %arg14: memref<1x128xf32, #tpu.memory_space<vmem>>, %arg15: memref<1x128xf32, #tpu.memory_space<vmem>>, %arg16: memref<1x128xf32, #tpu.memory_space<vmem>>, %arg17: memref<128x128xf32, #tpu.memory_space<vmem>>, %arg18: memref<1x128xf32, #tpu.memory_space<vmem>>, %arg19: memref<128x128xf32, #tpu.memory_space<vmem>>, %arg20: memref<128x128xf32, #tpu.memory_space<vmem>>) attributes {dimension_semantics = [], scalar_prefetch = 0 : i64, scratch_operands = 0 : i64, tpu.core_type = #tpu.core_type<tc>} {
    %c0 = arith.constant 0 : index
    %0 = memref.load %arg0[%c0] : memref<2xf32, #tpu.memory_space<smem>>
    %c1 = arith.constant 1 : index
    %1 = memref.load %arg0[%c1] : memref<2xf32, #tpu.memory_space<smem>>
    %c0_0 = arith.constant 0 : index
    %c0_1 = arith.constant 0 : index
    %2 = vector.load %arg1[%c0_0, %c0_1] : memref<128x128xf32, #tpu.memory_space<vmem>>, vector<128x128xf32>
    %c0_2 = arith.constant 0 : index
    %c0_3 = arith.constant 0 : index
    %3 = vector.load %arg3[%c0_2, %c0_3] : memref<128x128xf32, #tpu.memory_space<vmem>>, vector<128x128xf32>
    %cst = arith.constant dense<0.000000e+00> : vector<128x128xf32>
    %4 = tpu.matmul %3, %2, %cst {dimension_numbers = #tpu.dot_dimension_numbers<[1], [0], [0], [1], [0, 0, 1, 1], [], []>} : vector<128x128xf32>, vector<128x128xf32>, vector<128x128xf32> -> vector<128x128xf32>
    %c0_4 = arith.constant 0 : index
    %c0_5 = arith.constant 0 : index
    %5 = vector.load %arg2[%c0_4, %c0_5] : memref<128x128xf32, #tpu.memory_space<vmem>>, vector<128x128xf32>
    %c0_6 = arith.constant 0 : index
    %c0_7 = arith.constant 0 : index
    %6 = vector.load %arg5[%c0_6, %c0_7] : memref<128x128xf32, #tpu.memory_space<vmem>>, vector<128x128xf32>
    %c0_8 = arith.constant 0 : index
    %c0_9 = arith.constant 0 : index
    %7 = vector.load %arg6[%c0_8, %c0_9] : memref<1x128xf32, #tpu.memory_space<vmem>>, vector<1x128xf32>
    %c0_10 = arith.constant 0 : index
    %c0_11 = arith.constant 0 : index
    %8 = vector.load %arg7[%c0_10, %c0_11] : memref<1x128xf32, #tpu.memory_space<vmem>>, vector<1x128xf32>
    %c0_12 = arith.constant 0 : index
    %c0_13 = arith.constant 0 : index
    %9 = vector.load %arg8[%c0_12, %c0_13] : memref<1x128xf32, #tpu.memory_space<vmem>>, vector<1x128xf32>
    %c0_14 = arith.constant 0 : index
    %c0_15 = arith.constant 0 : index
    %10 = vector.load %arg9[%c0_14, %c0_15] : memref<128x128xf32, #tpu.memory_space<vmem>>, vector<128x128xf32>
    %c0_16 = arith.constant 0 : index
    %c0_17 = arith.constant 0 : index
    %11 = vector.load %arg10[%c0_16, %c0_17] : memref<1x128xf32, #tpu.memory_space<vmem>>, vector<1x128xf32>
    %cst_18 = arith.constant 1.000000e+00 : f32
    %12 = arith.addf %cst_18, %0 : f32
    %13 = vector.broadcast %12 : f32 to vector<128x128xf32>
    %14 = arith.mulf %13, %5 : vector<128x128xf32>
    %15 = arith.addf %14, %4 : vector<128x128xf32>
    %cst_19 = arith.constant dense<0.000000e+00> : vector<128x128xf32>
    %16 = tpu.matmul %15, %6, %cst_19 {dimension_numbers = #tpu.dot_dimension_numbers<[1], [0], [0], [1], [0, 0, 1, 1], [], []>} : vector<128x128xf32>, vector<128x128xf32>, vector<128x128xf32> -> vector<128x128xf32>
    %17 = vector.broadcast %7 : vector<1x128xf32> to vector<128x128xf32>
    %18 = arith.addf %16, %17 : vector<128x128xf32>
    %19 = tpu.iota {dimensions = array<i32: 0>} : vector<128x128xi32>
    %c16_i32 = arith.constant 16 : i32
    %20 = vector.broadcast %c16_i32 : i32 to vector<128x128xi32>
    %21 = arith.cmpi slt, %19, %20 : vector<128x128xi32>
    %22 = arith.extui %21 : vector<128x128xi1> to vector<128x128xi32>
    %23 = arith.sitofp %22 : vector<128x128xi32> to vector<128x128xf32>
    %24 = arith.mulf %18, %23 : vector<128x128xf32>
    %cst_20 = arith.constant dense<0.000000e+00> : vector<128xf32>
    %25 = vector.multi_reduction <add>, %24, %cst_20 [0] : vector<128x128xf32> to vector<128xf32>
    %26 = vector.shape_cast %25 : vector<128xf32> to vector<1x128xf32>
    %cst_21 = arith.constant 6.250000e-02 : f32
    %27 = vector.broadcast %cst_21 : f32 to vector<1x128xf32>
    %28 = arith.mulf %26, %27 : vector<1x128xf32>
    %29 = vector.broadcast %28 : vector<1x128xf32> to vector<128x128xf32>
    %30 = arith.subf %18, %29 : vector<128x128xf32>
    %31 = arith.mulf %30, %23 : vector<128x128xf32>
    %32 = arith.mulf %31, %31 : vector<128x128xf32>
    %cst_22 = arith.constant dense<0.000000e+00> : vector<128xf32>
    %33 = vector.multi_reduction <add>, %32, %cst_22 [0] : vector<128x128xf32> to vector<128xf32>
    %34 = vector.shape_cast %33 : vector<128xf32> to vector<1x128xf32>
    %cst_23 = arith.constant 6.250000e-02 : f32
    %35 = vector.broadcast %cst_23 : f32 to vector<1x128xf32>
    %36 = arith.mulf %34, %35 : vector<1x128xf32>
    %37 = vector.broadcast %28 : vector<1x128xf32> to vector<128x128xf32>
    %38 = arith.subf %18, %37 : vector<128x128xf32>
    %cst_24 = arith.constant 9.99999974E-6 : f32
    %39 = vector.broadcast %cst_24 : f32 to vector<1x128xf32>
    %40 = arith.addf %36, %39 : vector<1x128xf32>
    %41 = math.rsqrt %40 : vector<1x128xf32>
    %42 = vector.broadcast %41 : vector<1x128xf32> to vector<128x128xf32>
    %43 = arith.mulf %38, %42 : vector<128x128xf32>
    %44 = vector.broadcast %8 : vector<1x128xf32> to vector<128x128xf32>
    %45 = arith.mulf %43, %44 : vector<128x128xf32>
    %46 = vector.broadcast %9 : vector<1x128xf32> to vector<128x128xf32>
    %47 = arith.addf %45, %46 : vector<128x128xf32>
    %cst_25 = arith.constant 0.000000e+00 : f32
    %48 = vector.broadcast %cst_25 : f32 to vector<128x128xf32>
    %49 = arith.maximumf %47, %48 : vector<128x128xf32>
    %cst_26 = arith.constant dense<0.000000e+00> : vector<128x128xf32>
    %50 = tpu.matmul %49, %10, %cst_26 {dimension_numbers = #tpu.dot_dimension_numbers<[1], [0], [0], [1], [0, 0, 1, 1], [], []>} : vector<128x128xf32>, vector<128x128xf32>, vector<128x128xf32> -> vector<128x128xf32>
    %51 = vector.broadcast %11 : vector<1x128xf32> to vector<128x128xf32>
    %52 = arith.addf %50, %51 : vector<128x128xf32>
    %c0_27 = arith.constant 0 : index
    %c0_28 = arith.constant 0 : index
    %53 = vector.load %arg20[%c0_27, %c0_28] : memref<128x128xf32, #tpu.memory_space<vmem>>, vector<128x128xf32>
    tpu.vector_store %arg20[%c0_27, %c0_28], %52 {strides = array<i32>} : memref<128x128xf32, #tpu.memory_space<vmem>>, vector<128x128xf32>,
    %c0_29 = arith.constant 0 : index
    %c0_30 = arith.constant 0 : index
    %54 = vector.load %arg4[%c0_29, %c0_30] : memref<128x128xf32, #tpu.memory_space<vmem>>, vector<128x128xf32>
    %cst_31 = arith.constant dense<0.000000e+00> : vector<128x128xf32>
    %55 = tpu.matmul %54, %52, %cst_31 {dimension_numbers = #tpu.dot_dimension_numbers<[1], [0], [0], [1], [0, 0, 1, 1], [], []>} : vector<128x128xf32>, vector<128x128xf32>, vector<128x128xf32> -> vector<128x128xf32>
    %c0_32 = arith.constant 0 : index
    %c0_33 = arith.constant 0 : index
    %56 = vector.load %arg11[%c0_32, %c0_33] : memref<128x128xf32, #tpu.memory_space<vmem>>, vector<128x128xf32>
    %cst_34 = arith.constant dense<0.000000e+00> : vector<128x128xf32>
    %57 = tpu.matmul %2, %56, %cst_34 {dimension_numbers = #tpu.dot_dimension_numbers<[1], [0], [0], [1], [0, 0, 1, 1], [], []>} : vector<128x128xf32>, vector<128x128xf32>, vector<128x128xf32> -> vector<128x128xf32>
    %c0_35 = arith.constant 0 : index
    %c0_36 = arith.constant 0 : index
    %58 = vector.load %arg12[%c0_35, %c0_36] : memref<1x128xf32, #tpu.memory_space<vmem>>, vector<1x128xf32>
    %59 = vector.broadcast %58 : vector<1x128xf32> to vector<128x128xf32>
    %60 = arith.addf %57, %59 : vector<128x128xf32>
    %c0_37 = arith.constant 0 : index
    %c0_38 = arith.constant 0 : index
    %61 = vector.load %arg13[%c0_37, %c0_38] : memref<128x128xf32, #tpu.memory_space<vmem>>, vector<128x128xf32>
    %c0_39 = arith.constant 0 : index
    %c0_40 = arith.constant 0 : index
    %62 = vector.load %arg14[%c0_39, %c0_40] : memref<1x128xf32, #tpu.memory_space<vmem>>, vector<1x128xf32>
    %c0_41 = arith.constant 0 : index
    %c0_42 = arith.constant 0 : index
    %63 = vector.load %arg15[%c0_41, %c0_42] : memref<1x128xf32, #tpu.memory_space<vmem>>, vector<1x128xf32>
    %c0_43 = arith.constant 0 : index
    %c0_44 = arith.constant 0 : index
    %64 = vector.load %arg16[%c0_43, %c0_44] : memref<1x128xf32, #tpu.memory_space<vmem>>, vector<1x128xf32>
    %c0_45 = arith.constant 0 : index
    %c0_46 = arith.constant 0 : index
    %65 = vector.load %arg17[%c0_45, %c0_46] : memref<128x128xf32, #tpu.memory_space<vmem>>, vector<128x128xf32>
    %c0_47 = arith.constant 0 : index
    %c0_48 = arith.constant 0 : index
    %66 = vector.load %arg18[%c0_47, %c0_48] : memref<1x128xf32, #tpu.memory_space<vmem>>, vector<1x128xf32>
    %cst_49 = arith.constant 1.000000e+00 : f32
    %67 = arith.addf %cst_49, %1 : f32
    %68 = vector.broadcast %67 : f32 to vector<128x128xf32>
    %69 = arith.mulf %68, %60 : vector<128x128xf32>
    %70 = arith.addf %69, %55 : vector<128x128xf32>
    %cst_50 = arith.constant dense<0.000000e+00> : vector<128x128xf32>
    %71 = tpu.matmul %70, %61, %cst_50 {dimension_numbers = #tpu.dot_dimension_numbers<[1], [0], [0], [1], [0, 0, 1, 1], [], []>} : vector<128x128xf32>, vector<128x128xf32>, vector<128x128xf32> -> vector<128x128xf32>
    %72 = vector.broadcast %62 : vector<1x128xf32> to vector<128x128xf32>
    %73 = arith.addf %71, %72 : vector<128x128xf32>
    %74 = tpu.iota {dimensions = array<i32: 0>} : vector<128x128xi32>
    %c24_i32 = arith.constant 24 : i32
    %75 = vector.broadcast %c24_i32 : i32 to vector<128x128xi32>
    %76 = arith.cmpi slt, %74, %75 : vector<128x128xi32>
    %77 = arith.extui %76 : vector<128x128xi1> to vector<128x128xi32>
    %78 = arith.sitofp %77 : vector<128x128xi32> to vector<128x128xf32>
    %79 = arith.mulf %73, %78 : vector<128x128xf32>
    %cst_51 = arith.constant dense<0.000000e+00> : vector<128xf32>
    %80 = vector.multi_reduction <add>, %79, %cst_51 [0] : vector<128x128xf32> to vector<128xf32>
    %81 = vector.shape_cast %80 : vector<128xf32> to vector<1x128xf32>
    %cst_52 = arith.constant 0.0416666679 : f32
    %82 = vector.broadcast %cst_52 : f32 to vector<1x128xf32>
    %83 = arith.mulf %81, %82 : vector<1x128xf32>
    %84 = vector.broadcast %83 : vector<1x128xf32> to vector<128x128xf32>
    %85 = arith.subf %73, %84 : vector<128x128xf32>
    %86 = arith.mulf %85, %78 : vector<128x128xf32>
    %87 = arith.mulf %86, %86 : vector<128x128xf32>
    %cst_53 = arith.constant dense<0.000000e+00> : vector<128xf32>
    %88 = vector.multi_reduction <add>, %87, %cst_53 [0] : vector<128x128xf32> to vector<128xf32>
    %89 = vector.shape_cast %88 : vector<128xf32> to vector<1x128xf32>
    %cst_54 = arith.constant 0.0416666679 : f32
    %90 = vector.broadcast %cst_54 : f32 to vector<1x128xf32>
    %91 = arith.mulf %89, %90 : vector<1x128xf32>
    %92 = vector.broadcast %83 : vector<1x128xf32> to vector<128x128xf32>
    %93 = arith.subf %73, %92 : vector<128x128xf32>
    %cst_55 = arith.constant 9.99999974E-6 : f32
    %94 = vector.broadcast %cst_55 : f32 to vector<1x128xf32>
    %95 = arith.addf %91, %94 : vector<1x128xf32>
    %96 = math.rsqrt %95 : vector<1x128xf32>
    %97 = vector.broadcast %96 : vector<1x128xf32> to vector<128x128xf32>
    %98 = arith.mulf %93, %97 : vector<128x128xf32>
    %99 = vector.broadcast %63 : vector<1x128xf32> to vector<128x128xf32>
    %100 = arith.mulf %98, %99 : vector<128x128xf32>
    %101 = vector.broadcast %64 : vector<1x128xf32> to vector<128x128xf32>
    %102 = arith.addf %100, %101 : vector<128x128xf32>
    %cst_56 = arith.constant 0.000000e+00 : f32
    %103 = vector.broadcast %cst_56 : f32 to vector<128x128xf32>
    %104 = arith.maximumf %102, %103 : vector<128x128xf32>
    %cst_57 = arith.constant dense<0.000000e+00> : vector<128x128xf32>
    %105 = tpu.matmul %104, %65, %cst_57 {dimension_numbers = #tpu.dot_dimension_numbers<[1], [0], [0], [1], [0, 0, 1, 1], [], []>} : vector<128x128xf32>, vector<128x128xf32>, vector<128x128xf32> -> vector<128x128xf32>
    %106 = vector.broadcast %66 : vector<1x128xf32> to vector<128x128xf32>
    %107 = arith.addf %105, %106 : vector<128x128xf32>
    %c0_58 = arith.constant 0 : index
    %c0_59 = arith.constant 0 : index
    %108 = vector.load %arg19[%c0_58, %c0_59] : memref<128x128xf32, #tpu.memory_space<vmem>>, vector<128x128xf32>
    tpu.vector_store %arg19[%c0_58, %c0_59], %107 {strides = array<i32>} : memref<128x128xf32, #tpu.memory_space<vmem>>, vector<128x128xf32>,
    return
  }
}

</mosaic_0001>

<bundles_post_ra>
// kernel: hgin_forward.1
= control target key start
LH: loop header
LB: loop body
LE: loop exit
PB: predicated region body
PF: predicated region fallthrough
CT: control target
= control target key end

     0   :  { %s3786_s0 = inlined_call_operand.vmem [shape: f32[2], index: 0, kind: input, shape index: {}]   ;;  %s3787_s1 = inlined_call_operand.vmem [shape: f32[128,128], index: 1, kind: input, shape index: {}]   ;;  %s3788_s2 = inlined_call_operand.vmem [shape: f32[128,128], index: 2, kind: input, shape index: {}]   ;;  %s3789_s3 = inlined_call_operand.vmem [shape: f32[128,128], index: 3, kind: input, shape index: {}]   ;;  %s3790_s4 = inlined_call_operand.vmem [shape: f32[128,128], index: 4, kind: input, shape index: {}]   ;;  %s3791_s5 = inlined_call_operand.vmem [shape: f32[128,128], index: 5, kind: input, shape index: {}]   ;;  %s3792_s6 = inlined_call_operand.vmem [shape: f32[1,128], index: 6, kind: input, shape index: {}]   ;;  %s3793_s7 = inlined_call_operand.vmem [shape: f32[1,128], index: 7, kind: input, shape index: {}]   ;;  %s3794_s8 = inlined_call_operand.vmem [shape: f32[1,128], index: 8, kind: input, shape index: {}]   ;;  %s3795_s9 = inlined_call_operand.vmem [shape: f32[128,128], index: 9, kind: input, shape index: {}]   ;;  %s3796_s10 = inlined_call_operand.vmem [shape: f32[1,128], index: 10, kind: input, shape index: {}]   ;;  %s3797_s11 = inlined_call_operand.vmem [shape: f32[128,128], index: 11, kind: input, shape index: {}]   ;;  %s3798_s12 = inlined_call_operand.vmem [shape: f32[1,128], index: 12, kind: input, shape index: {}]   ;;  %s3799_s13 = inlined_call_operand.vmem [shape: f32[128,128], index: 13, kind: input, shape index: {}]   ;;  %s3800_s14 = inlined_call_operand.vmem [shape: f32[1,128], index: 14, kind: input, shape index: {}]   ;;  %s3801_s15 = inlined_call_operand.vmem [shape: f32[1,128], index: 15, kind: input, shape index: {}]   ;;  %s3802_s16 = inlined_call_operand.vmem [shape: f32[1,128], index: 16, kind: input, shape index: {}]   ;;  %s3803_s17 = inlined_call_operand.vmem [shape: f32[128,128], index: 17, kind: input, shape index: {}]   ;;  %s3804_s18 = inlined_call_operand.vmem [shape: f32[1,128], index: 18, kind: input, shape index: {}]   ;;  %s3805_s19 = inlined_call_operand.vmem [shape: f32[128,128], index: 19, kind: output, shape index: {0}]   ;;  %s3806_s20 = inlined_call_operand.vmem [shape: f32[128,128], index: 20, kind: output, shape index: {1}]  }
   0x1   :  { %3811 = sst [smem:[#allocation5_spill]] %s3786_s0 }
   0x2   :  { %3812 = sst [smem:[#allocation6_spill]] %s3787_s1 }
   0x3   :  { %3813 = sst [smem:[#allocation7_spill]] %s3788_s2 }
   0x4   :  { %3814 = sst [smem:[#allocation8_spill]] %s3789_s3 }
   0x5   :  { %3815 = sst [smem:[#allocation9_spill]] %s3790_s4 }
   0x6   :  { %26 = vsyncpa [#allocation3], 0  ;;  %s3816_s23 = sld [smem:[#allocation5_spill]] }
   0xc   :  { %s33_s24 = sshll.u32 %s3816_s23, 4  ;;  %s34_s24 = int_to_ptr.vmem [resolvable:$true] %s33_s24 }
   0xd   :  { %s2742_s2 = scalar_lea.vmem %s34_s24, 16  ;;  %p2747_p1 = scmp.lt.s32.totalorder %s34_s24, %s34_s24 }
   0xe   :  { %p2743_p0 = scmp.ne.s32.totalorder %s34_s24, %s2742_s2  ;;  %p2748_p2 = scmp.lt.s32.totalorder %s2742_s2, %s2742_s2 }
  0x10   :  { %p2749_p3 = por %p2748_p2, %p2747_p1 }
  0x12   :  { %p2750_p4 = pnand %p2749_p3, %p2743_p0 }
  0x14   :  { %2753 = shalt.err (!%p2750_p4)
}
  0x15   :  { %s2756_s25 = smov [#allocation2]  }
  0x16   :  { %36 = dma.vmem_to_smem %s34_s24, 16, %s2756_s25, [#allocation3]  }
  0x17   :  { %2754 = dma.done.wait [#allocation3], 16  }
  0x18   :  { %2755 = vsyncadd [#allocation3], 4294967280 }
  0x19   :  { %76 = sfence }
  0x1a   :  { %s3817_s27 = sld [smem:[#allocation6_spill]]  ;;  %s3818_s3 = sld [smem:[#allocation8_spill]]  ;;  %v272_v15 = vld [vmem:[%s3791_s5] sm:$0xff]  ;;  %v273_v16 = vld [vmem:[%s3791_s5 + $0x8] sm:$0xff]  ;;  %v274_v17 = vld [vmem:[%s3791_s5 + $0x10] sm:$0xff] }
  0x1b   :  { %v275_v18 = vld [vmem:[%s3791_s5 + $0x18] sm:$0xff]  ;;  %v2529_v19 = vpack.c.bf16 %v273_v16, %v272_v15  ;;  %v276_v22 = vld [vmem:[%s3791_s5 + $0x20] sm:$0xff]  ;;  %v277_v23 = vld [vmem:[%s3791_s5 + $0x28] sm:$0xff]  ;;  %s77_s28 = sld [smem:[#allocation2]] }
  0x1c   :  { %v2533_v20 = vpack.c.bf16 %v275_v18, %v274_v17  ;;  %v2537_v26 = vpack.c.bf16 %v277_v23, %v276_v22  ;;  %v278_v28 = vld [vmem:[%s3791_s5 + $0x30] sm:$0xff]  ;;  %v279_v29 = vld [vmem:[%s3791_s5 + $0x38] sm:$0xff]  ;;  %v280_v34 = vld [vmem:[%s3791_s5 + $0x40] sm:$0xff] }
  0x1d   :  { %2530 = vmatprep.subr.bf16.mxu1 %v2529_v19  ;;  %v2541_v32 = vpack.c.bf16 %v279_v29, %v278_v28  ;;  %v281_v35 = vld [vmem:[%s3791_s5 + $0x48] sm:$0xff]  ;;  %v282_v40 = vld [vmem:[%s3791_s5 + $0x50] sm:$0xff]  ;;  %v283_v41 = vld [vmem:[%s3791_s5 + $0x58] sm:$0xff] }
  0x1e   :  { %2532 = vmatpush3.bf16.msra.mxu1 %v2529_v19  ;;  %v2545_v38 = vpack.c.bf16 %v281_v35, %v280_v34  ;;  %v2549_v42 = vpack.c.bf16 %v283_v41, %v282_v40  ;;  %v284_v43 = vld [vmem:[%s3791_s5 + $0x60] sm:$0xff]  ;;  %v285_v44 = vld [vmem:[%s3791_s5 + $0x68] sm:$0xff]  ;;  %v286_v61 = vld [vmem:[%s3791_s5 + $0x70] sm:$0xff] }
  0x1f   :  { %2534 = vmatprep.subr.bf16.mxu1 %v2533_v20  ;;  %v2553_v46 = vpack.c.bf16 %v285_v44, %v284_v43  ;;  %v287_v62 = vld [vmem:[%s3791_s5 + $0x78] sm:$0xff] }
  0x20   :  { %v2868_v0 = vld [vmem:[%s3817_s27] sm:$0xff]  ;;  %v2873_v1 = vld [vmem:[%s3817_s27 + $0x8] sm:$0xff]  ;;  %v2878_v2 = vld [vmem:[%s3817_s27 + $0x10] sm:$0xff]  ;;  %v2557_v63 = vpack.c.bf16 %v287_v62, %v286_v61 }
  0x21   :  { %v2497_v3 = vpack.c.bf16 %v2873_v1, %v2868_v0  ;;  %v2885_v4 = vld [vmem:[%s3817_s27 + $0x18] sm:$0xff]  ;;  %v2892_v6 = vld [vmem:[%s3817_s27 + $0x20] sm:$0xff]  ;;  %v2897_v7 = vld [vmem:[%s3817_s27 + $0x28] sm:$0xff]  ;;  %s308_s4 = sadd.f32 1.0, %s77_s28 }
  0x22   :  { %v2501_v5 = vpack.c.bf16 %v2885_v4, %v2878_v2  ;;  %v2505_v8 = vpack.c.bf16 %v2897_v7, %v2892_v6  ;;  %v95_v9 = vld [vmem:[%s3818_s3] sm:$0xff]  ;;  %v2907_v10 = vld [vmem:[%s3817_s27 + $0x30] sm:$0xff]  ;;  %v2912_v11 = vld [vmem:[%s3817_s27 + $0x38] sm:$0xff]  ;;  %2536 = vmatpush3.bf16.msra.mxu1 %v2533_v20 }
  0x23   :  { %2498 = vmatprep.subr.bf16.mxu0 %v2497_v3  ;;  %2137 = vmatprep.mubr.f32.mxu0 %v95_v9  ;;  %v2509_v12 = vpack.c.bf16 %v2912_v11, %v2907_v10  ;;  %v2919_v13 = vld [vmem:[%s3817_s27 + $0x40] sm:$0xff]  ;;  %v2924_v14 = vld [vmem:[%s3817_s27 + $0x48] sm:$0xff]  ;;  %v2949_v24 = vld [vmem:[%s3817_s27 + $0x50] sm:$0xff] }
  0x24   :  { %2500 = vmatpush3.bf16.msra.mxu0 %v2497_v3  ;;  %v2513_v21 = vpack.c.bf16 %v2924_v14, %v2919_v13  ;;  %v2954_v25 = vld [vmem:[%s3817_s27 + $0x58] sm:$0xff]  ;;  %v2967_v30 = vld [vmem:[%s3817_s27 + $0x60] sm:$0xff]  ;;  %v2972_v31 = vld [vmem:[%s3817_s27 + $0x68] sm:$0xff]  ;;  %2538 = vmatprep.subr.bf16.mxu1 %v2537_v26  ;;  %v3057_v3 = vstv %s308_s4 }
  0x25   :  { %2502 = vmatprep.subr.bf16.mxu0 %v2501_v5  ;;  %v2517_v27 = vpack.c.bf16 %v2954_v25, %v2949_v24  ;;  %v2521_v33 = vpack.c.bf16 %v2972_v31, %v2967_v30  ;;  %v2985_v36 = vld [vmem:[%s3817_s27 + $0x70] sm:$0xff]  ;;  %v2990_v37 = vld [vmem:[%s3817_s27 + $0x78] sm:$0xff]  ;;  %v96_v45 = vld [vmem:[%s3818_s3 + $0x8] sm:$0xff]  ;;  %s3819_s27 = sld [smem:[#allocation7_spill]] }
  0x26   :  { %2540 = vmatpush3.bf16.msra.mxu1 %v2537_v26  ;;  %v2525_v39 = vpack.c.bf16 %v2990_v37, %v2985_v36  ;;  %v97_v47 = vld [vmem:[%s3818_s3 + $0x10] sm:$0xff]  ;;  %v98_v48 = vld [vmem:[%s3818_s3 + $0x18] sm:$0xff]  ;;  %v99_v49 = vld [vmem:[%s3818_s3 + $0x20] sm:$0xff] }
  0x27   :  { %2542 = vmatprep.subr.bf16.mxu1 %v2541_v32  ;;  %v100_v50 = vld [vmem:[%s3818_s3 + $0x28] sm:$0xff]  ;;  %v101_v51 = vld [vmem:[%s3818_s3 + $0x30] sm:$0xff]  ;;  %v102_v52 = vld [vmem:[%s3818_s3 + $0x38] sm:$0xff] }
  0x28   :  { %2504 = vmatpush3.bf16.msra.mxu0 %v2501_v5  ;;  %v103_v53 = vld [vmem:[%s3818_s3 + $0x40] sm:$0xff]  ;;  %v104_v54 = vld [vmem:[%s3818_s3 + $0x48] sm:$0xff]  ;;  %v105_v55 = vld [vmem:[%s3818_s3 + $0x50] sm:$0xff] }
  0x29   :  { %2506 = vmatprep.subr.bf16.mxu0 %v2505_v8  ;;  %v106_v56 = vld [vmem:[%s3818_s3 + $0x58] sm:$0xff]  ;;  %v107_v57 = vld [vmem:[%s3818_s3 + $0x60] sm:$0xff]  ;;  %v108_v58 = vld [vmem:[%s3818_s3 + $0x68] sm:$0xff] }
  0x2a   :  { %2544 = vmatpush3.bf16.msra.mxu1 %v2541_v32  ;;  %v109_v59 = vld [vmem:[%s3818_s3 + $0x70] sm:$0xff]  ;;  %v110_v60 = vld [vmem:[%s3818_s3 + $0x78] sm:$0xff]  ;;  %s3820_s3 = sld [smem:[#allocation9_spill]] }
  0x2b   :  { %2546 = vmatprep.subr.bf16.mxu1 %v2545_v38  ;;  %v256_v5 = vld [vmem:[%s3819_s27] sm:$0xff]  ;;  %v258_v15 = vld [vmem:[%s3819_s27 + $0x10] sm:$0xff]  ;;  %v259_v17 = vld [vmem:[%s3819_s27 + $0x18] sm:$0xff] }
  0x2c   :  { %2508 = vmatpush3.bf16.msra.mxu0 %v2505_v8  ;;  %v257_v8 = vld [vmem:[%s3819_s27 + $0x8] sm:$0xff]  ;;  %v310_v9 = vmul.f32 %v3057_v3, %v256_v5  ;;  %v312_v20 = vmul.f32 %v3057_v3, %v258_v15  ;;  %v313_v22 = vmul.f32 %v3057_v3, %v259_v17  ;;  %v260_v23 = vld [vmem:[%s3819_s27 + $0x20] sm:$0xff]  ;;  %v262_v35 = vld [vmem:[%s3819_s27 + $0x30] sm:$0xff] }
  0x2d   :  { %2510 = vmatprep.subr.bf16.mxu0 %v2509_v12  ;;  %v314_v32 = vmul.f32 %v3057_v3, %v260_v23  ;;  %v268_v61 = vld [vmem:[%s3819_s27 + $0x60] sm:$0xff] }
  0x2e   :  { %2548 = vmatpush3.bf16.msra.mxu1 %v2545_v38 }
  0x2f   :  { %2550 = vmatprep.subr.bf16.mxu1 %v2549_v42 }
  0x30   :  { %2512 = vmatpush3.bf16.msra.mxu0 %v2509_v12  ;;  %v311_v12 = vmul.f32 %v3057_v3, %v257_v8 }
  0x31   :  { %2514 = vmatprep.subr.bf16.mxu0 %v2513_v21 }
  0x32   :  { %2552 = vmatpush3.bf16.msra.mxu1 %v2549_v42  ;;  %v316_v42 = vmul.f32 %v3057_v3, %v262_v35  ;;  %v294_v35 = vld [vmem:[%s3795_s9 + $0x18] sm:$0xff] }
  0x33   :  { %2554 = vmatprep.subr.bf16.mxu1 %v2553_v46 }
  0x34   :  { %2516 = vmatpush3.bf16.msra.mxu0 %v2513_v21 }
  0x35   :  { %2518 = vmatprep.subr.bf16.mxu0 %v2517_v27 }
  0x36   :  { %2556 = vmatpush3.bf16.msra.mxu1 %v2553_v46 }
  0x37   :  { %2558 = vmatprep.subr.bf16.mxu1 %v2557_v63 }
  0x38   :  { %2520 = vmatpush3.bf16.msra.mxu0 %v2517_v27  ;;  %v261_v27 = vld [vmem:[%s3819_s27 + $0x28] sm:$0xff] }
  0x39   :  { %2522 = vmatprep.subr.bf16.mxu0 %v2521_v33  ;;  %v315_v34 = vmul.f32 %v3057_v3, %v261_v27 }
  0x3a   :  { %2560 = vmatpush3.bf16.msra.mxu1 %v2557_v63  ;;  %v269_v63 = vld [vmem:[%s3819_s27 + $0x68] sm:$0xff] }
  0x3b   :  { %v323_v15 = vmul.f32 %v3057_v3, %v269_v63 }
  0x3c   :  { %2524 = vmatpush3.bf16.msra.mxu0 %v2521_v33 }
  0x3d   :  { %2526 = vmatprep.subr.bf16.mxu0 %v2525_v39 }
  0x40   :  { %2528 = vmatpush3.bf16.msra.mxu0 %v2525_v39  ;;  %v263_v39 = vld [vmem:[%s3819_s27 + $0x38] sm:$0xff] }
  0x41   :  { %v317_v44 = vmul.f32 %v3057_v3, %v263_v39  ;;  %v295_v39 = vld [vmem:[%s3795_s9 + $0x20] sm:$0xff] }
  0x43   :  { %2138 = vmatmul.mubr.f32.vlgmr.msra.gmra.mrb[0].mxu0 %v96_v45  ;;  %v264_v45 = vld [vmem:[%s3819_s27 + $0x40] sm:$0xff] }
  0x44   :  { %2140 = vmatprep.mubr.f32.mxu0 %v97_v47  ;;  %v265_v47 = vld [vmem:[%s3819_s27 + $0x48] sm:$0xff] }
  0x47   :  { %2141 = vmatmul.mubr.f32.gmra.mrb[2].mxu0 %v98_v48 }
  0x48   :  { %2143 = vmatprep.mubr.f32.mxu0 %v99_v49 }
  0x4b   :  { %2144 = vmatmul.mubr.f32.gmra.mrb[4].mxu0 %v100_v50  ;;  %v318_v50 = vmul.f32 %v3057_v3, %v264_v45  ;;  %v299_v45 = vld [vmem:[%s3795_s9 + $0x40] sm:$0xff] }
  0x4c   :  { %2146 = vmatprep.mubr.f32.mxu0 %v101_v51 }
  0x4f   :  { %2147 = vmatmul.mubr.f32.gmra.mrb[6].mxu0 %v102_v52  ;;  %v319_v52 = vmul.f32 %v3057_v3, %v265_v47 }
  0x50   :  { %2149 = vmatprep.mubr.f32.mxu0 %v103_v53  ;;  %v266_v53 = vld [vmem:[%s3819_s27 + $0x50] sm:$0xff] }
  0x53   :  { %2150 = vmatmul.mubr.f32.gmra.mrb[8].mxu0 %v104_v54 }
  0x54   :  { %2152 = vmatprep.mubr.f32.mxu0 %v105_v55  ;;  %v267_v55 = vld [vmem:[%s3819_s27 + $0x58] sm:$0xff] }
  0x57   :  { %2153 = vmatmul.mubr.f32.gmra.mrb[10].mxu0 %v106_v56 }
  0x58   :  { %2155 = vmatprep.mubr.f32.mxu0 %v107_v57 }
  0x5b   :  { %2156 = vmatmul.mubr.f32.gmra.mrb[12].mxu0 %v108_v58  ;;  %v320_v58 = vmul.f32 %v3057_v3, %v266_v53 }
  0x5c   :  { %2158 = vmatprep.mubr.f32.mxu0 %v109_v59 }
  0x5f   :  { %2159 = vmatmul.mubr.f32.gmra.mrb[14].mxu0 %v110_v60  ;;  %v321_v60 = vmul.f32 %v3057_v3, %v267_v55  ;;  %v306_v55 = vld [vmem:[%s3795_s9 + $0x78] sm:$0xff] }
 0x116   :  { %v2139_v16 = vpop.f32.mrb[0].mxu0 }
 0x117   :  { %v177_v18 = vpop.f32.mrb[1].mxu0  ;;  %v327_v21 = vadd.f32 %v2139_v16, %v311_v12  ;;  %v270_v16 = vld [vmem:[%s3819_s27 + $0x70] sm:$0xff] }
 0x118   :  { %v326_v19 = vadd.f32 %v310_v9, %v177_v18  ;;  %v322_v9 = vmul.f32 %v3057_v3, %v268_v61  ;;  %v271_v18 = vld [vmem:[%s3819_s27 + $0x78] sm:$0xff] }
 0x119   :  { %v325_v23 = vmul.f32 %v3057_v3, %v271_v18 }
 0x11a   :  { %v2142_v26 = vpop.f32.mrb[2].mxu0  ;;  %2193 = vmatprep.mubr.f32.mxu1 %v326_v19 }
 0x11b   :  { %v187_v28 = vpop.f32.mrb[3].mxu0  ;;  %2194 = vmatmul.mubr.f32.vlgmr.msra.gmra.mrb[0].mxu1 %v327_v21  ;;  %v329_v33 = vadd.f32 %v2142_v26, %v313_v22  ;;  %v324_v21 = vmul.f32 %v3057_v3, %v270_v16  ;;  %v293_v3 = vld [vmem:[%s3795_s9 + $0x10] sm:$0xff] }
 0x11c   :  { %v328_v29 = vadd.f32 %v312_v20, %v187_v28 }
 0x11e   :  { %v2145_v38 = vpop.f32.mrb[4].mxu0  ;;  %2196 = vmatprep.mubr.f32.mxu1 %v328_v29 }
 0x11f   :  { %v197_v40 = vpop.f32.mrb[5].mxu0  ;;  %2197 = vmatmul.mubr.f32.gmra.mrb[2].mxu1 %v329_v33  ;;  %v331_v43 = vadd.f32 %v2145_v38, %v315_v34  ;;  %v292_v33 = vld [vmem:[%s3795_s9 + $0x8] sm:$0xff]  ;;  %v2565_v38 = vpack.c.bf16 %v294_v35, %v293_v3 }
 0x120   :  { %v330_v41 = vadd.f32 %v314_v32, %v197_v40  ;;  %v291_v32 = vld [vmem:[%s3795_s9] sm:$0xff]  ;;  %v296_v40 = vld [vmem:[%s3795_s9 + $0x28] sm:$0xff] }
 0x121   :  { %v2561_v34 = vpack.c.bf16 %v292_v33, %v291_v32 }
 0x122   :  { %v2148_v46 = vpop.f32.mrb[6].mxu0  ;;  %2199 = vmatprep.mubr.f32.mxu1 %v330_v41  ;;  %v2569_v41 = vpack.c.bf16 %v296_v40, %v295_v39 }
 0x123   :  { %v207_v48 = vpop.f32.mrb[7].mxu0  ;;  %2200 = vmatmul.mubr.f32.gmra.mrb[4].mxu1 %v331_v43  ;;  %v333_v51 = vadd.f32 %v2148_v46, %v317_v44  ;;  %2562 = vmatprep.subr.bf16.mxu0 %v2561_v34  ;;  %v298_v43 = vld [vmem:[%s3795_s9 + $0x38] sm:$0xff]  ;;  %v300_v46 = vld [vmem:[%s3795_s9 + $0x48] sm:$0xff] }
 0x124   :  { %v332_v49 = vadd.f32 %v316_v42, %v207_v48  ;;  %2564 = vmatpush3.bf16.msra.mxu0 %v2561_v34  ;;  %v297_v42 = vld [vmem:[%s3795_s9 + $0x30] sm:$0xff]  ;;  %v2577_v47 = vpack.c.bf16 %v300_v46, %v299_v45 }
 0x125   :  { %2566 = vmatprep.subr.bf16.mxu0 %v2565_v38  ;;  %v2573_v44 = vpack.c.bf16 %v298_v43, %v297_v42  ;;  %v301_v48 = vld [vmem:[%s3795_s9 + $0x50] sm:$0xff] }
 0x126   :  { %v2151_v54 = vpop.f32.mrb[8].mxu0  ;;  %2202 = vmatprep.mubr.f32.mxu1 %v332_v49  ;;  %v302_v49 = vld [vmem:[%s3795_s9 + $0x58] sm:$0xff] }
 0x127   :  { %v217_v56 = vpop.f32.mrb[9].mxu0  ;;  %2203 = vmatmul.mubr.f32.gmra.mrb[6].mxu1 %v333_v51  ;;  %v335_v59 = vadd.f32 %v2151_v54, %v319_v52  ;;  %v303_v51 = vld [vmem:[%s3795_s9 + $0x60] sm:$0xff]  ;;  %v304_v52 = vld [vmem:[%s3795_s9 + $0x68] sm:$0xff]  ;;  %v305_v54 = vld [vmem:[%s3795_s9 + $0x70] sm:$0xff] }
 0x128   :  { %v334_v57 = vadd.f32 %v318_v50, %v217_v56  ;;  %2568 = vmatpush3.bf16.msra.mxu0 %v2565_v38  ;;  %v2581_v50 = vpack.c.bf16 %v302_v49, %v301_v48  ;;  %v2585_v53 = vpack.c.bf16 %v304_v52, %v303_v51  ;;  %v2589_v56 = vpack.c.bf16 %v306_v55, %v305_v54 }
 0x129   :  { %2570 = vmatprep.subr.bf16.mxu0 %v2569_v41 }
 0x12a   :  { %v2154_v62 = vpop.f32.mrb[10].mxu0  ;;  %2205 = vmatprep.mubr.f32.mxu1 %v334_v57  ;;  %v1872_v57 = vld [vmem:[%s3792_s6] ss:$0 sm:$0xff] }
 0x12b   :  { %v227_v5 = vpop.f32.mrb[11].mxu0  ;;  %2206 = vmatmul.mubr.f32.gmra.mrb[8].mxu1 %v335_v59  ;;  %v337_v12 = vadd.f32 %v2154_v62, %v321_v60 }
 0x12c   :  { %v336_v8 = vadd.f32 %v320_v58, %v227_v5  ;;  %2572 = vmatpush3.bf16.msra.mxu0 %v2569_v41 }
 0x12d   :  { %2574 = vmatprep.subr.bf16.mxu0 %v2573_v44 }
 0x12e   :  { %v2157_v17 = vpop.f32.mrb[12].mxu0  ;;  %2208 = vmatprep.mubr.f32.mxu1 %v336_v8 }
 0x12f   :  { %v237_v19 = vpop.f32.mrb[13].mxu0  ;;  %2209 = vmatmul.mubr.f32.gmra.mrb[10].mxu1 %v337_v12  ;;  %v339_v22 = vadd.f32 %v2157_v17, %v323_v15 }
 0x130   :  { %v338_v20 = vadd.f32 %v322_v9, %v237_v19  ;;  %2576 = vmatpush3.bf16.msra.mxu0 %v2573_v44 }
 0x131   :  { %2578 = vmatprep.subr.bf16.mxu0 %v2577_v47 }
 0x132   :  { %v2160_v26 = vpop.f32.mrb[14].mxu0  ;;  %2211 = vmatprep.mubr.f32.mxu1 %v338_v20 }
 0x133   :  { %v247_v27 = vpop.f32.mrb[15].mxu0  ;;  %2212 = vmatmul.mubr.f32.gmra.mrb[12].mxu1 %v339_v22  ;;  %v341_v29 = vadd.f32 %v2160_v26, %v325_v23 }
 0x134   :  { %v340_v28 = vadd.f32 %v324_v21, %v247_v27  ;;  %2580 = vmatpush3.bf16.msra.mxu0 %v2577_v47 }
 0x135   :  { %2582 = vmatprep.subr.bf16.mxu0 %v2581_v50 }
 0x136   :  { %2214 = vmatprep.mubr.f32.mxu1 %v340_v28 }
 0x137   :  { %2215 = vmatmul.mubr.f32.gmra.mrb[14].mxu1 %v341_v29 }
 0x138   :  { %2584 = vmatpush3.bf16.msra.mxu0 %v2581_v50 }
 0x139   :  { %2586 = vmatprep.subr.bf16.mxu0 %v2585_v53 }
 0x13c   :  { %2588 = vmatpush3.bf16.msra.mxu0 %v2585_v53 }
 0x13d   :  { %2590 = vmatprep.subr.bf16.mxu0 %v2589_v56 }
 0x140   :  { %2592 = vmatpush3.bf16.msra.mxu0 %v2589_v56 }
 0x1ee   :  { %v2195_v58 = vpop.f32.mrb[0].mxu1 }
 0x1ef   :  { %v3174_v59 = vadd.f32 %v2195_v58, %v1872_v57  ;;  %v414_v60 = vpop.f32.mrb[1].mxu1 }
 0x1f0   :  { %v3176_v61 = vadd.f32 %v1872_v57, %v414_v60 }
 0x1f2   :  { %v574_v62 = vadd.f32 %v3174_v59, %v3176_v61  ;;  %v2198_v63 = vpop.f32.mrb[2].mxu1 }
 0x1f3   :  { %v424_v5 = vpop.f32.mrb[3].mxu1  ;;  %v3180_v8 = vadd.f32 %v2198_v63, %v1872_v57 }
 0x1f4   :  { %v425_v9 = vadd.f32 %v1872_v57, %v424_v5 }
 0x1f5   :  { %v561_v17 = vmul.f32 0.0, %v3180_v8 }
 0x1f6   :  { %v560_v12 = vmul.f32 0.0, %v425_v9  ;;  %v2201_v15 = vpop.f32.mrb[4].mxu1 }
 0x1f7   :  { %v434_v16 = vpop.f32.mrb[5].mxu1  ;;  %v440_v19 = vadd.f32 %v2201_v15, %v1872_v57 }
 0x1f8   :  { %v575_v18 = vadd.f32 %v574_v62, %v560_v12  ;;  %v435_v20 = vadd.f32 %v1872_v57, %v434_v16 }
 0x1f9   :  { %v563_v27 = vmul.f32 0.0, %v440_v19 }
 0x1fa   :  { %v562_v21 = vmul.f32 0.0, %v435_v20  ;;  %v576_v22 = vadd.f32 %v575_v18, %v561_v17  ;;  %v2204_v23 = vpop.f32.mrb[6].mxu1 }
 0x1fb   :  { %v444_v26 = vpop.f32.mrb[7].mxu1  ;;  %v450_v29 = vadd.f32 %v2204_v23, %v1872_v57 }
 0x1fc   :  { %v577_v28 = vadd.f32 %v576_v22, %v562_v21  ;;  %v445_v32 = vadd.f32 %v1872_v57, %v444_v26 }
 0x1fd   :  { %v565_v38 = vmul.f32 0.0, %v450_v29 }
 0x1fe   :  { %v564_v33 = vmul.f32 0.0, %v445_v32  ;;  %v578_v34 = vadd.f32 %v577_v28, %v563_v27  ;;  %v2207_v3 = vpop.f32.mrb[8].mxu1 }
 0x1ff   :  { %v454_v35 = vpop.f32.mrb[9].mxu1  ;;  %v460_v40 = vadd.f32 %v2207_v3, %v1872_v57 }
 0x200   :  { %v579_v39 = vadd.f32 %v578_v34, %v564_v33  ;;  %v455_v41 = vadd.f32 %v1872_v57, %v454_v35 }
 0x201   :  { %v567_v46 = vmul.f32 0.0, %v460_v40 }
 0x202   :  { %v566_v42 = vmul.f32 0.0, %v455_v41  ;;  %v580_v43 = vadd.f32 %v579_v39, %v565_v38  ;;  %v2210_v44 = vpop.f32.mrb[10].mxu1 }
 0x203   :  { %v464_v45 = vpop.f32.mrb[11].mxu1  ;;  %v470_v48 = vadd.f32 %v2210_v44, %v1872_v57 }
 0x204   :  { %v581_v47 = vadd.f32 %v580_v43, %v566_v42  ;;  %v465_v49 = vadd.f32 %v1872_v57, %v464_v45 }
 0x205   :  { %v569_v54 = vmul.f32 0.0, %v470_v48 }
 0x206   :  { %v568_v50 = vmul.f32 0.0, %v465_v49  ;;  %v582_v51 = vadd.f32 %v581_v47, %v567_v46  ;;  %v2213_v52 = vpop.f32.mrb[12].mxu1 }
 0x207   :  { %v474_v53 = vpop.f32.mrb[13].mxu1  ;;  %v480_v56 = vadd.f32 %v2213_v52, %v1872_v57 }
 0x208   :  { %v583_v55 = vadd.f32 %v582_v51, %v568_v50  ;;  %v475_v58 = vadd.f32 %v1872_v57, %v474_v53 }
 0x209   :  { %v571_v12 = vmul.f32 0.0, %v480_v56 }
 0x20a   :  { %v570_v60 = vmul.f32 0.0, %v475_v58  ;;  %v584_v62 = vadd.f32 %v583_v55, %v569_v54  ;;  %v2216_v63 = vpop.f32.mrb[14].mxu1 }
 0x20b   :  { %v484_v5 = vpop.f32.mrb[15].mxu1  ;;  %v490_v16 = vadd.f32 %v2216_v63, %v1872_v57 }
 0x20c   :  { %v585_v15 = vadd.f32 %v584_v62, %v570_v60  ;;  %v485_v17 = vadd.f32 %v1872_v57, %v484_v5 }
 0x20d   :  { %v573_v22 = vmul.f32 0.0, %v490_v16 }
 0x20e   :  { %v572_v18 = vmul.f32 0.0, %v485_v17  ;;  %v586_v21 = vadd.f32 %v585_v15, %v571_v12 }
 0x210   :  { %v587_v23 = vadd.f32 %v586_v21, %v572_v18 }
 0x212   :  { %v588_v26 = vadd.f32 %v587_v23, %v573_v22 }
 0x214   :  { %v589_v27 = vrot.slane %v588_v26, 4 }
 0x216   :  { %v590_v28 = vadd.f32 %v589_v27, %v588_v26 }
 0x218   :  { %v591_v33 = vrot.slane %v590_v28, 2 }
 0x21a   :  { %v592_v34 = vadd.f32 %v591_v33, %v590_v28 }
 0x21c   :  { %v593_v3 = vrot.slane %v592_v34, 1 }
 0x21e   :  { %v594_v35 = vadd.f32 %v593_v3, %v592_v34 }
 0x220   :  { %v595_v38 = vmul.f32 0.0625, %v594_v35 }
 0x222   :  { %v3184_v39 = vsub.f32 %v3176_v61, %v595_v38  ;;  %v3187_v42 = vsub.f32 %v3174_v59, %v595_v38  ;;  %v3189_v43 = vsub.f32 %v425_v9, %v595_v38  ;;  %v3192_v57 = vsub.f32 %v3180_v8, %v595_v38 }
 0x223   :  { %v3194_v44 = vsub.f32 %v435_v20, %v595_v38  ;;  %v3196_v45 = vsub.f32 %v440_v19, %v595_v38  ;;  %v3198_v46 = vsub.f32 %v445_v32, %v595_v38  ;;  %v3200_v47 = vsub.f32 %v450_v29, %v595_v38 }
 0x224   :  { %v3202_v50 = vsub.f32 %v455_v41, %v595_v38  ;;  %v3204_v61 = vsub.f32 %v460_v40, %v595_v38  ;;  %v3206_v51 = vsub.f32 %v465_v49, %v595_v38  ;;  %v3208_v59 = vsub.f32 %v470_v48, %v595_v38 }
 0x225   :  { %v3210_v9 = vsub.f32 %v475_v58, %v595_v38  ;;  %v3212_v8 = vsub.f32 %v480_v56, %v595_v38  ;;  %v610_v20 = vsub.f32 %v485_v17, %v595_v38  ;;  %v3214_v52 = vsub.f32 %v490_v16, %v595_v38 }
 0x226   :  { %v614_v19 = vmul.f32 0.0, %v3189_v43  ;;  %v628_v29 = vmul.f32 %v3184_v39, %v3184_v39  ;;  %v629_v32 = vmul.f32 %v3187_v42, %v3187_v42  ;;  %v615_v40 = vmul.f32 0.0, %v3192_v57 }
 0x227   :  { %v616_v48 = vmul.f32 0.0, %v3194_v44  ;;  %v617_v53 = vmul.f32 0.0, %v3196_v45  ;;  %v618_v56 = vmul.f32 0.0, %v3198_v46  ;;  %v619_v62 = vmul.f32 0.0, %v3200_v47 }
 0x228   :  { %v630_v41 = vmul.f32 %v614_v19, %v614_v19  ;;  %v644_v49 = vadd.f32 %v629_v32, %v628_v29  ;;  %v631_v54 = vmul.f32 %v615_v40, %v615_v40  ;;  %v620_v12 = vmul.f32 0.0, %v3202_v50 }
 0x229   :  { %v632_v58 = vmul.f32 %v616_v48, %v616_v48  ;;  %v633_v63 = vmul.f32 %v617_v53, %v617_v53  ;;  %v634_v15 = vmul.f32 %v618_v56, %v618_v56  ;;  %v621_v17 = vmul.f32 0.0, %v3204_v61 }
 0x22a   :  { %v645_v55 = vadd.f32 %v644_v49, %v630_v41  ;;  %v635_v18 = vmul.f32 %v619_v62, %v619_v62  ;;  %v622_v22 = vmul.f32 0.0, %v3206_v51  ;;  %v636_v23 = vmul.f32 %v620_v12, %v620_v12 }
 0x22b   :  { %v623_v27 = vmul.f32 0.0, %v3208_v59  ;;  %v637_v28 = vmul.f32 %v621_v17, %v621_v17  ;;  %v624_v34 = vmul.f32 0.0, %v3210_v9  ;;  %v625_v38 = vmul.f32 0.0, %v3212_v8 }
 0x22c   :  { %v646_v60 = vadd.f32 %v645_v55, %v631_v54  ;;  %v638_v3 = vmul.f32 %v622_v22, %v622_v22  ;;  %v626_v32 = vmul.f32 0.0, %v610_v20  ;;  %v627_v48 = vmul.f32 0.0, %v3214_v52  ;;  %v3236_v22 = vld [vmem:[%s3793_s7] ss:$0 sm:$0xff] }
 0x22d   :  { %v639_v19 = vmul.f32 %v623_v27, %v623_v27  ;;  %v640_v40 = vmul.f32 %v624_v34, %v624_v34  ;;  %v641_v49 = vmul.f32 %v625_v38, %v625_v38 }
 0x22e   :  { %v647_v5 = vadd.f32 %v646_v60, %v632_v58  ;;  %v642_v54 = vmul.f32 %v626_v32, %v626_v32  ;;  %v643_v56 = vmul.f32 %v627_v48, %v627_v48 }
 0x230   :  { %v648_v16 = vadd.f32 %v647_v5, %v633_v63 }
 0x232   :  { %v649_v21 = vadd.f32 %v648_v16, %v634_v15 }
 0x234   :  { %v650_v26 = vadd.f32 %v649_v21, %v635_v18 }
 0x236   :  { %v651_v33 = vadd.f32 %v650_v26, %v636_v23 }
 0x238   :  { %v652_v35 = vadd.f32 %v651_v33, %v637_v28  ;;  %v3246_v33 = vld [vmem:[%s3794_s8] ss:$0 sm:$0xff] }
 0x23a   :  { %v653_v29 = vadd.f32 %v652_v35, %v638_v3 }
 0x23c   :  { %v654_v41 = vadd.f32 %v653_v29, %v639_v19 }
 0x23e   :  { %v655_v53 = vadd.f32 %v654_v41, %v640_v40 }
 0x240   :  { %v656_v55 = vadd.f32 %v655_v53, %v641_v49 }
 0x242   :  { %v657_v58 = vadd.f32 %v656_v55, %v642_v54 }
 0x244   :  { %v658_v60 = vadd.f32 %v657_v58, %v643_v56 }
 0x246   :  { %v659_v62 = vrot.slane %v658_v60, 4 }
 0x248   :  { %v660_v63 = vadd.f32 %v659_v62, %v658_v60 }
 0x24a   :  { %v661_v5 = vrot.slane %v660_v63, 2 }
 0x24c   :  { %v662_v12 = vadd.f32 %v661_v5, %v660_v63 }
 0x24e   :  { %v663_v15 = vrot.slane %v662_v12, 1 }
 0x250   :  { %v664_v16 = vadd.f32 %v663_v15, %v662_v12 }
 0x252   :  { %v665_v17 = vmul.f32 0.0625, %v664_v16 }
 0x254   :  { %v666_v18 = vadd.f32 1e-05, %v665_v17 }
 0x256   :  { %2738 = vrsqrt.f32 %v666_v18 }
 0x260   :  { %v2739_v21 = vpop.eup %2738 }
 0x261   :  { %v3238_v23 = vmul.f32 %v2739_v21, %v610_v20  ;;  %v668_v26 = vmul.f32 %v2739_v21, %v3184_v39  ;;  %v669_v27 = vmul.f32 %v2739_v21, %v3187_v42  ;;  %v670_v28 = vmul.f32 %v2739_v21, %v3189_v43 }
 0x262   :  { %v671_v34 = vmul.f32 %v2739_v21, %v3192_v57  ;;  %v672_v3 = vmul.f32 %v2739_v21, %v3194_v44  ;;  %v673_v35 = vmul.f32 %v2739_v21, %v3196_v45  ;;  %v674_v20 = vmul.f32 %v2739_v21, %v3198_v46 }
 0x263   :  { %v690_v38 = vmul.f32 %v3236_v22, %v668_v26  ;;  %v691_v39 = vmul.f32 %v3236_v22, %v669_v27  ;;  %v692_v42 = vmul.f32 %v3236_v22, %v670_v28  ;;  %v675_v43 = vmul.f32 %v2739_v21, %v3200_v47 }
 0x264   :  { %v693_v19 = vmul.f32 %v3236_v22, %v671_v34  ;;  %v694_v29 = vmul.f32 %v3236_v22, %v672_v3  ;;  %v695_v48 = vmul.f32 %v3236_v22, %v673_v35  ;;  %v696_v47 = vmul.f32 %v3236_v22, %v674_v20 }
 0x265   :  { %v712_v57 = vadd.f32 %v3246_v33, %v690_v38  ;;  %v713_v44 = vadd.f32 %v3246_v33, %v691_v39  ;;  %v714_v45 = vadd.f32 %v3246_v33, %v692_v42  ;;  %v676_v53 = vmul.f32 %v2739_v21, %v3202_v50 }
 0x266   :  { %v715_v40 = vadd.f32 %v3246_v33, %v693_v19  ;;  %v716_v41 = vadd.f32 %v3246_v33, %v694_v29  ;;  %v677_v54 = vmul.f32 %v2739_v21, %v3204_v61  ;;  %v678_v55 = vmul.f32 %v2739_v21, %v3206_v51 }
 0x267   :  { %v728_v32 = vmax.f32 %v712_v57, 0.0  ;;  %v729_v46 = vmax.f32 %v713_v44, 0.0  ;;  %v730_v49 = vmax.f32 %v714_v45, 0.0  ;;  %v679_v56 = vmul.f32 %v2739_v21, %v3208_v59 }
 0x268   :  { %v680_v58 = vmul.f32 %v2739_v21, %v3210_v9  ;;  %v681_v60 = vmul.f32 %v2739_v21, %v3212_v8  ;;  %v683_v62 = vmul.f32 %v2739_v21, %v3214_v52  ;;  %v731_v63 = vmax.f32 %v715_v40, 0.0 }
 0x269   :  { %2249 = vmatprep.mubr.f32.mxu0 %v728_v32  ;;  %v717_v5 = vadd.f32 %v3246_v33, %v695_v48  ;;  %v697_v12 = vmul.f32 %v3236_v22, %v675_v43  ;;  %v732_v50 = vmax.f32 %v716_v41, 0.0  ;;  %v718_v61 = vadd.f32 %v3246_v33, %v696_v47  ;;  %v1075_v41 = vld [vmem:[%s3797_s11 + $0x18] sm:$0xff]  ;;  %v1076_v48 = vld [vmem:[%s3797_s11 + $0x20] sm:$0xff]  ;;  %v1077_v47 = vld [vmem:[%s3797_s11 + $0x28] sm:$0xff] }
 0x26a   :  { %2250 = vmatmul.mubr.f32.vlgmr.msra.gmra.mrb[16].mxu0 %v729_v46  ;;  %v698_v51 = vmul.f32 %v3236_v22, %v676_v53  ;;  %v699_v8 = vmul.f32 %v3236_v22, %v677_v54  ;;  %v700_v16 = vmul.f32 %v3236_v22, %v678_v55  ;;  %v701_v21 = vmul.f32 %v3236_v22, %v679_v56  ;;  %v1078_v53 = vld [vmem:[%s3797_s11 + $0x30] sm:$0xff]  ;;  %v1079_v54 = vld [vmem:[%s3797_s11 + $0x38] sm:$0xff]  ;;  %v1080_v56 = vld [vmem:[%s3797_s11 + $0x40] sm:$0xff] }
 0x26b   :  { %2252 = vmatprep.mubr.f32.mxu0 %v730_v49  ;;  %v733_v59 = vmax.f32 %v717_v5, 0.0  ;;  %v719_v9 = vadd.f32 %v3246_v33, %v697_v12  ;;  %v734_v15 = vmax.f32 %v718_v61, 0.0  ;;  %v702_v28 = vmul.f32 %v3236_v22, %v680_v58  ;;  %v1081_v58 = vld [vmem:[%s3797_s11 + $0x48] sm:$0xff]  ;;  %v1084_v12 = vld [vmem:[%s3797_s11 + $0x60] sm:$0xff] }
 0x26c   :  { %v720_v52 = vadd.f32 %v3246_v33, %v698_v51  ;;  %v721_v18 = vadd.f32 %v3246_v33, %v699_v8  ;;  %v722_v27 = vadd.f32 %v3246_v33, %v700_v16  ;;  %v723_v3 = vadd.f32 %v3246_v33, %v701_v21  ;;  %v1086_v51 = vld [vmem:[%s3797_s11 + $0x70] sm:$0xff]  ;;  %v911_v8 = vld [vmem:[%s3820_s3] sm:$0xff] }
 0x26d   :  { %v735_v17 = vmax.f32 %v719_v9, 0.0  ;;  %v703_v35 = vmul.f32 %v3236_v22, %v681_v60  ;;  %v724_v38 = vadd.f32 %v3246_v33, %v702_v28  ;;  %v704_v39 = vmul.f32 %v3236_v22, %v3238_v23  ;;  %v1072_v23 = vld [vmem:[%s3797_s11] sm:$0xff]  ;;  %2305 = vmatprep.mubr.f32.mxu1 %v911_v8 }
 0x26e   :  { %2253 = vmatmul.mubr.f32.gmra.mrb[18].mxu0 %v731_v63  ;;  %v736_v26 = vmax.f32 %v720_v52, 0.0  ;;  %v737_v34 = vmax.f32 %v721_v18, 0.0  ;;  %v738_v20 = vmax.f32 %v722_v27, 0.0  ;;  %v739_v42 = vmax.f32 %v723_v3, 0.0  ;;  %v1083_v63 = vld [vmem:[%s3797_s11 + $0x58] sm:$0xff] }
 0x26f   :  { %2255 = vmatprep.mubr.f32.mxu0 %v732_v50  ;;  %v725_v43 = vadd.f32 %v3246_v33, %v703_v35  ;;  %v705_v19 = vmul.f32 %v3236_v22, %v683_v62  ;;  %v740_v29 = vmax.f32 %v724_v38, 0.0  ;;  %v726_v57 = vadd.f32 %v3246_v33, %v704_v39  ;;  %v1073_v22 = vld [vmem:[%s3797_s11 + $0x8] sm:$0xff]  ;;  %v1082_v62 = vld [vmem:[%s3797_s11 + $0x50] sm:$0xff] }
 0x270   :  { %v2625_v40 = vpack.c.bf16 %v1073_v22, %v1072_v23  ;;  %v2633_v49 = vpack.c.bf16 %v1077_v47, %v1076_v48  ;;  %v2637_v55 = vpack.c.bf16 %v1079_v54, %v1078_v53  ;;  %v2641_v60 = vpack.c.bf16 %v1081_v58, %v1080_v56  ;;  %v1085_v50 = vld [vmem:[%s3797_s11 + $0x68] sm:$0xff]  ;;  %v1240_v23 = vld [vmem:[%s3799_s13] sm:$0xff]  ;;  %v1243_v48 = vld [vmem:[%s3799_s13 + $0x18] sm:$0xff] }
 0x271   :  { %v741_v44 = vmax.f32 %v725_v43, 0.0  ;;  %v727_v45 = vadd.f32 %v3246_v33, %v705_v19  ;;  %v742_v32 = vmax.f32 %v726_v57, 0.0  ;;  %v1074_v33 = vld [vmem:[%s3797_s11 + $0x10] sm:$0xff]  ;;  %v2645_v5 = vpack.c.bf16 %v1083_v63, %v1082_v62  ;;  %v1241_v22 = vld [vmem:[%s3799_s13 + $0x8] sm:$0xff]  ;;  %v1244_v54 = vld [vmem:[%s3799_s13 + $0x20] sm:$0xff] }
 0x272   :  { %2256 = vmatmul.mubr.f32.gmra.mrb[20].mxu0 %v733_v59  ;;  %2626 = vmatprep.subr.bf16.mxu0 %v2625_v40  ;;  %v2649_v61 = vpack.c.bf16 %v1085_v50, %v1084_v12  ;;  %v1087_v59 = vld [vmem:[%s3797_s11 + $0x78] sm:$0xff]  ;;  %v912_v47 = vld [vmem:[%s3820_s3 + $0x8] sm:$0xff]  ;;  %v915_v58 = vld [vmem:[%s3820_s3 + $0x20] sm:$0xff] }
 0x273   :  { %2258 = vmatprep.mubr.f32.mxu0 %v734_v15  ;;  %v743_v46 = vmax.f32 %v727_v45, 0.0  ;;  %2628 = vmatpush3.bf16.msra.mxu0 %v2625_v40  ;;  %v2653_v9 = vpack.c.bf16 %v1087_v59, %v1086_v51  ;;  %v914_v56 = vld [vmem:[%s3820_s3 + $0x18] sm:$0xff]  ;;  %v1246_v62 = vld [vmem:[%s3799_s13 + $0x30] sm:$0xff]  ;;  %v1249_v51 = vld [vmem:[%s3799_s13 + $0x48] sm:$0xff] }
 0x274   :  { %v1247_v63 = vld [vmem:[%s3799_s13 + $0x38] sm:$0xff]  ;;  %v917_v12 = vld [vmem:[%s3820_s3 + $0x30] sm:$0xff] }
 0x275   :  { %v2669_v50 = vpack.c.bf16 %v1247_v63, %v1246_v62  ;;  %v918_v59 = vld [vmem:[%s3820_s3 + $0x38] sm:$0xff] }
 0x276   :  { %2259 = vmatmul.mubr.f32.gmra.mrb[22].mxu0 %v735_v17 }
 0x277   :  { %2261 = vmatprep.mubr.f32.mxu0 %v736_v26 }
 0x27a   :  { %2262 = vmatmul.mubr.f32.gmra.mrb[24].mxu0 %v737_v34 }
 0x27b   :  { %2264 = vmatprep.mubr.f32.mxu0 %v738_v20 }
 0x27e   :  { %2265 = vmatmul.mubr.f32.gmra.mrb[26].mxu0 %v739_v42 }
 0x27f   :  { %2267 = vmatprep.mubr.f32.mxu0 %v740_v29 }
 0x282   :  { %2268 = vmatmul.mubr.f32.gmra.mrb[28].mxu0 %v741_v44 }
 0x283   :  { %2270 = vmatprep.mubr.f32.mxu0 %v742_v32 }
 0x286   :  { %2271 = vmatmul.mubr.f32.gmra.mrb[30].mxu0 %v743_v46 }
 0x287   :  { %2361 = vmatprep.mubr.f32.mxu0 %v2868_v0  ;;  %v2629_v0 = vpack.c.bf16 %v1075_v41, %v1074_v33  ;;  %v2657_v41 = vpack.c.bf16 %v1241_v22, %v1240_v23 }
 0x289   :  { %2630 = vmatprep.subr.bf16.mxu0 %v2629_v0 }
 0x28a   :  { %2632 = vmatpush3.bf16.msra.mxu0 %v2629_v0  ;;  %v1242_v0 = vld [vmem:[%s3799_s13 + $0x10] sm:$0xff] }
 0x28b   :  { %2634 = vmatprep.subr.bf16.mxu0 %v2633_v49  ;;  %v2661_v53 = vpack.c.bf16 %v1243_v48, %v1242_v0 }
 0x28e   :  { %2636 = vmatpush3.bf16.msra.mxu0 %v2633_v49  ;;  %v913_v49 = vld [vmem:[%s3820_s3 + $0x10] sm:$0xff] }
 0x28f   :  { %2638 = vmatprep.subr.bf16.mxu0 %v2637_v55 }
 0x292   :  { %2640 = vmatpush3.bf16.msra.mxu0 %v2637_v55  ;;  %v1245_v55 = vld [vmem:[%s3799_s13 + $0x28] sm:$0xff] }
 0x293   :  { %2642 = vmatprep.subr.bf16.mxu0 %v2641_v60 }
 0x296   :  { %2644 = vmatpush3.bf16.msra.mxu0 %v2641_v60  ;;  %v2665_v60 = vpack.c.bf16 %v1245_v55, %v1244_v54 }
 0x297   :  { %2646 = vmatprep.subr.bf16.mxu0 %v2645_v5 }
 0x29a   :  { %2648 = vmatpush3.bf16.msra.mxu0 %v2645_v5  ;;  %v916_v5 = vld [vmem:[%s3820_s3 + $0x28] sm:$0xff] }
 0x29b   :  { %2650 = vmatprep.subr.bf16.mxu0 %v2649_v61 }
 0x29e   :  { %2652 = vmatpush3.bf16.msra.mxu0 %v2649_v61  ;;  %v1248_v61 = vld [vmem:[%s3799_s13 + $0x40] sm:$0xff] }
 0x29f   :  { %2654 = vmatprep.subr.bf16.mxu0 %v2653_v9  ;;  %v2673_v8 = vpack.c.bf16 %v1249_v51, %v1248_v61 }
 0x2a2   :  { %2656 = vmatpush3.bf16.msra.mxu0 %v2653_v9  ;;  %v919_v9 = vld [vmem:[%s3820_s3 + $0x40] sm:$0xff] }
 0x2a5   :  { %2362 = vmatmul.mubr.f32.vlgmr.msra.gmra.mrb[32].mxu0 %v2873_v1  ;;  %v3363_v1 = vld [vmem:[%s3796_s10] ss:$0 sm:$0xff] }
 0x2a6   :  { %2364 = vmatprep.mubr.f32.mxu0 %v2878_v2 }
 0x2a9   :  { %2365 = vmatmul.mubr.f32.gmra.mrb[34].mxu0 %v2885_v4 }
 0x2aa   :  { %2367 = vmatprep.mubr.f32.mxu0 %v2892_v6 }
 0x2ad   :  { %2368 = vmatmul.mubr.f32.gmra.mrb[36].mxu0 %v2897_v7 }
 0x2ae   :  { %2370 = vmatprep.mubr.f32.mxu0 %v2907_v10 }
 0x2b1   :  { %2371 = vmatmul.mubr.f32.gmra.mrb[38].mxu0 %v2912_v11 }
 0x2b2   :  { %2373 = vmatprep.mubr.f32.mxu0 %v2919_v13 }
 0x2b5   :  { %2374 = vmatmul.mubr.f32.gmra.mrb[40].mxu0 %v2924_v14 }
 0x2b6   :  { %2376 = vmatprep.mubr.f32.mxu0 %v2949_v24 }
 0x2b9   :  { %2377 = vmatmul.mubr.f32.gmra.mrb[42].mxu0 %v2954_v25 }
 0x2ba   :  { %2379 = vmatprep.mubr.f32.mxu0 %v2967_v30 }
 0x2bd   :  { %2380 = vmatmul.mubr.f32.gmra.mrb[44].mxu0 %v2972_v31 }
 0x2be   :  { %2382 = vmatprep.mubr.f32.mxu0 %v2985_v36 }
 0x2c1   :  { %2383 = vmatmul.mubr.f32.gmra.mrb[46].mxu0 %v2990_v37 }
 0x33d   :  { %v2251_v2 = vpop.f32.mrb[16].mxu0 }
 0x33e   :  { %v822_v4 = vadd.f32 %v2251_v2, %v3363_v1  ;;  %v816_v6 = vpop.f32.mrb[17].mxu0  ;;  %v1251_v2 = vld [vmem:[%s3799_s13 + $0x58] sm:$0xff] }
 0x33f   :  { %v817_v7 = vadd.f32 %v3363_v1, %v816_v6  ;;  %v921_v6 = vld [vmem:[%s3820_s3 + $0x50] sm:$0xff] }
 0x340   :  { %896 = vst [vmem:[%s3806_s20 + $0x8] sm:$0xff] %v822_v4 }
 0x341   :  { %895 = vst [vmem:[%s3806_s20] sm:$0xff] %v817_v7  ;;  %v2593_v10 = vpack.c.bf16 %v822_v4, %v817_v7  ;;  %v2254_v11 = vpop.f32.mrb[18].mxu0  ;;  %v920_v4 = vld [vmem:[%s3820_s3 + $0x48] sm:$0xff] }
 0x342   :  { %v832_v13 = vadd.f32 %v2254_v11, %v3363_v1  ;;  %v826_v14 = vpop.f32.mrb[19].mxu0  ;;  %v1253_v11 = vld [vmem:[%s3799_s13 + $0x68] sm:$0xff] }
 0x343   :  { %v827_v24 = vadd.f32 %v3363_v1, %v826_v14  ;;  %2594 = vmatprep.subr.bf16.mxu1 %v2593_v10  ;;  %v923_v14 = vld [vmem:[%s3820_s3 + $0x60] sm:$0xff] }
 0x344   :  { %898 = vst [vmem:[%s3806_s20 + $0x18] sm:$0xff] %v832_v13  ;;  %2596 = vmatpush3.bf16.msra.mxu1 %v2593_v10  ;;  %v1252_v10 = vld [vmem:[%s3799_s13 + $0x60] sm:$0xff] }
 0x345   :  { %897 = vst [vmem:[%s3806_s20 + $0x10] sm:$0xff] %v827_v24  ;;  %v2597_v25 = vpack.c.bf16 %v832_v13, %v827_v24  ;;  %v2257_v30 = vpop.f32.mrb[20].mxu0  ;;  %v922_v13 = vld [vmem:[%s3820_s3 + $0x58] sm:$0xff]  ;;  %v2681_v24 = vpack.c.bf16 %v1253_v11, %v1252_v10 }
 0x346   :  { %v842_v31 = vadd.f32 %v2257_v30, %v3363_v1  ;;  %v836_v36 = vpop.f32.mrb[21].mxu0  ;;  %v925_v30 = vld [vmem:[%s3820_s3 + $0x70] sm:$0xff] }
 0x347   :  { %v837_v37 = vadd.f32 %v3363_v1, %v836_v36  ;;  %2598 = vmatprep.subr.bf16.mxu1 %v2597_v25 }
 0x348   :  { %900 = vst [vmem:[%s3806_s20 + $0x28] sm:$0xff] %v842_v31  ;;  %2600 = vmatpush3.bf16.msra.mxu1 %v2597_v25  ;;  %v924_v25 = vld [vmem:[%s3820_s3 + $0x68] sm:$0xff] }
 0x349   :  { %899 = vst [vmem:[%s3806_s20 + $0x20] sm:$0xff] %v837_v37  ;;  %v2601_v15 = vpack.c.bf16 %v842_v31, %v837_v37  ;;  %v2260_v52 = vpop.f32.mrb[22].mxu0  ;;  %v926_v31 = vld [vmem:[%s3820_s3 + $0x78] sm:$0xff] }
 0x34a   :  { %v852_v16 = vadd.f32 %v2260_v52, %v3363_v1  ;;  %v846_v17 = vpop.f32.mrb[23].mxu0  ;;  %v1255_v52 = vld [vmem:[%s3799_s13 + $0x78] sm:$0xff] }
 0x34b   :  { %v847_v18 = vadd.f32 %v3363_v1, %v846_v17  ;;  %2602 = vmatprep.subr.bf16.mxu1 %v2601_v15 }
 0x34c   :  { %902 = vst [vmem:[%s3806_s20 + $0x38] sm:$0xff] %v852_v16  ;;  %2604 = vmatpush3.bf16.msra.mxu1 %v2601_v15  ;;  %v1254_v15 = vld [vmem:[%s3799_s13 + $0x70] sm:$0xff] }
 0x34d   :  { %901 = vst [vmem:[%s3806_s20 + $0x30] sm:$0xff] %v847_v18  ;;  %v2605_v21 = vpack.c.bf16 %v852_v16, %v847_v18  ;;  %v2263_v26 = vpop.f32.mrb[24].mxu0  ;;  %v2685_v16 = vpack.c.bf16 %v1255_v52, %v1254_v15 }
 0x34e   :  { %v862_v27 = vadd.f32 %v2263_v26, %v3363_v1  ;;  %v856_v28 = vpop.f32.mrb[25].mxu0 }
 0x34f   :  { %v857_v34 = vadd.f32 %v3363_v1, %v856_v28  ;;  %2606 = vmatprep.subr.bf16.mxu1 %v2605_v21 }
 0x350   :  { %904 = vst [vmem:[%s3806_s20 + $0x48] sm:$0xff] %v862_v27  ;;  %2608 = vmatpush3.bf16.msra.mxu1 %v2605_v21 }
 0x351   :  { %903 = vst [vmem:[%s3806_s20 + $0x40] sm:$0xff] %v857_v34  ;;  %v2609_v3 = vpack.c.bf16 %v862_v27, %v857_v34  ;;  %v2266_v35 = vpop.f32.mrb[26].mxu0 }
 0x352   :  { %v872_v20 = vadd.f32 %v2266_v35, %v3363_v1  ;;  %v866_v38 = vpop.f32.mrb[27].mxu0 }
 0x353   :  { %v867_v39 = vadd.f32 %v3363_v1, %v866_v38  ;;  %2610 = vmatprep.subr.bf16.mxu1 %v2609_v3 }
 0x354   :  { %906 = vst [vmem:[%s3806_s20 + $0x58] sm:$0xff] %v872_v20  ;;  %2612 = vmatpush3.bf16.msra.mxu1 %v2609_v3 }
 0x355   :  { %905 = vst [vmem:[%s3806_s20 + $0x50] sm:$0xff] %v867_v39  ;;  %v2613_v42 = vpack.c.bf16 %v872_v20, %v867_v39  ;;  %v2269_v43 = vpop.f32.mrb[28].mxu0 }
 0x356   :  { %v882_v19 = vadd.f32 %v2269_v43, %v3363_v1  ;;  %v876_v29 = vpop.f32.mrb[29].mxu0 }
 0x357   :  { %v877_v57 = vadd.f32 %v3363_v1, %v876_v29  ;;  %2614 = vmatprep.subr.bf16.mxu1 %v2613_v42 }
 0x358   :  { %908 = vst [vmem:[%s3806_s20 + $0x68] sm:$0xff] %v882_v19  ;;  %2616 = vmatpush3.bf16.msra.mxu1 %v2613_v42 }
 0x359   :  { %907 = vst [vmem:[%s3806_s20 + $0x60] sm:$0xff] %v877_v57  ;;  %v2617_v44 = vpack.c.bf16 %v882_v19, %v877_v57  ;;  %v2272_v45 = vpop.f32.mrb[30].mxu0  ;;  %v3529_v19 = vld [vmem:[%s3798_s12] ss:$0 sm:$0xff] }
 0x35a   :  { %v892_v32 = vadd.f32 %v2272_v45, %v3363_v1  ;;  %v886_v46 = vpop.f32.mrb[31].mxu0 }
 0x35b   :  { %v887_v40 = vadd.f32 %v3363_v1, %v886_v46  ;;  %2618 = vmatprep.subr.bf16.mxu1 %v2617_v44  ;;  %v1250_v1 = vld [vmem:[%s3799_s13 + $0x50] sm:$0xff]  ;;  %s1871_s13 = sld [smem:[#allocation2 + $0x1]] }
 0x35c   :  { %910 = vst [vmem:[%s3806_s20 + $0x78] sm:$0xff] %v892_v32  ;;  %2620 = vmatpush3.bf16.msra.mxu1 %v2617_v44  ;;  %v2677_v7 = vpack.c.bf16 %v1251_v2, %v1250_v1 }
 0x35d   :  { %909 = vst [vmem:[%s3806_s20 + $0x70] sm:$0xff] %v887_v40  ;;  %v2621_v33 = vpack.c.bf16 %v892_v32, %v887_v40 }
 0x35f   :  { %2622 = vmatprep.subr.bf16.mxu1 %v2621_v33 }
 0x360   :  { %2624 = vmatpush3.bf16.msra.mxu1 %v2621_v33 }
 0x361   :  { %2658 = vmatprep.subr.bf16.mxu1 %v2657_v41  ;;  %s1276_s1 = sadd.f32 1.0, %s1871_s13 }
 0x363   :  { %2306 = vmatmul.mubr.f32.vlgmr.msra.gmra.mrb[16].mxu1 %v912_v47  ;;  %v3533_v44 = vstv %s1276_s1 }
 0x364   :  { %2308 = vmatprep.mubr.f32.mxu1 %v913_v49  ;;  %2660 = vmatpush3.bf16.msra.mxu1 %v2657_v41 }
 0x365   :  { %2662 = vmatprep.subr.bf16.mxu1 %v2661_v53 }
 0x367   :  { %2309 = vmatmul.mubr.f32.gmra.mrb[18].mxu1 %v914_v56 }
 0x368   :  { %2311 = vmatprep.mubr.f32.mxu1 %v915_v58  ;;  %2664 = vmatpush3.bf16.msra.mxu1 %v2661_v53 }
 0x369   :  { %2666 = vmatprep.subr.bf16.mxu1 %v2665_v60 }
 0x36b   :  { %2312 = vmatmul.mubr.f32.gmra.mrb[20].mxu1 %v916_v5 }
 0x36c   :  { %2314 = vmatprep.mubr.f32.mxu1 %v917_v12  ;;  %2668 = vmatpush3.bf16.msra.mxu1 %v2665_v60 }
 0x36d   :  { %2670 = vmatprep.subr.bf16.mxu1 %v2669_v50 }
 0x36f   :  { %2315 = vmatmul.mubr.f32.gmra.mrb[22].mxu1 %v918_v59 }
 0x370   :  { %2317 = vmatprep.mubr.f32.mxu1 %v919_v9  ;;  %2672 = vmatpush3.bf16.msra.mxu1 %v2669_v50 }
 0x371   :  { %2674 = vmatprep.subr.bf16.mxu1 %v2673_v8 }
 0x373   :  { %2318 = vmatmul.mubr.f32.gmra.mrb[24].mxu1 %v920_v4 }
 0x374   :  { %2320 = vmatprep.mubr.f32.mxu1 %v921_v6  ;;  %2676 = vmatpush3.bf16.msra.mxu1 %v2673_v8 }
 0x375   :  { %2678 = vmatprep.subr.bf16.mxu1 %v2677_v7 }
 0x377   :  { %2321 = vmatmul.mubr.f32.gmra.mrb[26].mxu1 %v922_v13 }
 0x378   :  { %2323 = vmatprep.mubr.f32.mxu1 %v923_v14  ;;  %2680 = vmatpush3.bf16.msra.mxu1 %v2677_v7  ;;  %v2363_v36 = vpop.f32.mrb[32].mxu0 }
 0x379   :  { %2682 = vmatprep.subr.bf16.mxu1 %v2681_v24  ;;  %v1161_v37 = vpop.f32.mrb[33].mxu0  ;;  %v1167_v29 = vadd.f32 %v2363_v36, %v3529_v19 }
 0x37a   :  { %v1162_v57 = vadd.f32 %v3529_v19, %v1161_v37 }
 0x37b   :  { %2324 = vmatmul.mubr.f32.gmra.mrb[28].mxu1 %v924_v25  ;;  %v1279_v45 = vmul.f32 %v3533_v44, %v1167_v29 }
 0x37c   :  { %2326 = vmatprep.mubr.f32.mxu1 %v925_v30  ;;  %2684 = vmatpush3.bf16.msra.mxu1 %v2681_v24  ;;  %v2366_v17 = vpop.f32.mrb[34].mxu0  ;;  %v1278_v46 = vmul.f32 %v3533_v44, %v1162_v57 }
 0x37d   :  { %2686 = vmatprep.subr.bf16.mxu1 %v2685_v16  ;;  %v1171_v18 = vpop.f32.mrb[35].mxu0  ;;  %v1177_v32 = vadd.f32 %v2366_v17, %v3529_v19 }
 0x37e   :  { %v1172_v23 = vadd.f32 %v3529_v19, %v1171_v18 }
 0x37f   :  { %2327 = vmatmul.mubr.f32.gmra.mrb[30].mxu1 %v926_v31  ;;  %v1281_v41 = vmul.f32 %v3533_v44, %v1177_v32 }
 0x380   :  { %2688 = vmatpush3.bf16.msra.mxu1 %v2685_v16  ;;  %v2369_v21 = vpop.f32.mrb[36].mxu0  ;;  %v1280_v47 = vmul.f32 %v3533_v44, %v1172_v23 }
 0x381   :  { %v1181_v26 = vpop.f32.mrb[37].mxu0  ;;  %v1187_v0 = vadd.f32 %v2369_v21, %v3529_v19 }
 0x382   :  { %v1182_v49 = vadd.f32 %v3529_v19, %v1181_v26 }
 0x383   :  { %v1283_v56 = vmul.f32 %v3533_v44, %v1187_v0  ;;  %v1266_v0 = vld [vmem:[%s3803_s17 + $0x38] sm:$0xff] }
 0x384   :  { %v2372_v27 = vpop.f32.mrb[38].mxu0  ;;  %v1282_v62 = vmul.f32 %v3533_v44, %v1182_v49  ;;  %v1268_v49 = vld [vmem:[%s3803_s17 + $0x48] sm:$0xff] }
 0x385   :  { %v1191_v28 = vpop.f32.mrb[39].mxu0  ;;  %v1197_v58 = vadd.f32 %v2372_v27, %v3529_v19 }
 0x386   :  { %v1192_v63 = vadd.f32 %v3529_v19, %v1191_v28 }
 0x387   :  { %v1285_v61 = vmul.f32 %v3533_v44, %v1197_v58  ;;  %v1271_v58 = vld [vmem:[%s3803_s17 + $0x60] sm:$0xff] }
 0x388   :  { %v2375_v34 = vpop.f32.mrb[40].mxu0  ;;  %v1284_v9 = vmul.f32 %v3533_v44, %v1192_v63 }
 0x389   :  { %v1201_v3 = vpop.f32.mrb[41].mxu0  ;;  %v1207_v51 = vadd.f32 %v2375_v34, %v3529_v19 }
 0x38a   :  { %v1202_v8 = vadd.f32 %v3529_v19, %v1201_v3 }
 0x38b   :  { %v1287_v6 = vmul.f32 %v3533_v44, %v1207_v51 }
 0x38c   :  { %v2378_v35 = vpop.f32.mrb[42].mxu0  ;;  %v1286_v11 = vmul.f32 %v3533_v44, %v1202_v8 }
 0x38d   :  { %v1211_v20 = vpop.f32.mrb[43].mxu0  ;;  %v1217_v7 = vadd.f32 %v2378_v35, %v3529_v19 }
 0x38e   :  { %v1212_v13 = vadd.f32 %v3529_v19, %v1211_v20 }
 0x38f   :  { %v1289_v30 = vmul.f32 %v3533_v44, %v1217_v7 }
 0x390   :  { %v2381_v38 = vpop.f32.mrb[44].mxu0  ;;  %v1288_v37 = vmul.f32 %v3533_v44, %v1212_v13 }
 0x391   :  { %v1221_v39 = vpop.f32.mrb[45].mxu0  ;;  %v1227_v31 = vadd.f32 %v2381_v38, %v3529_v19 }
 0x392   :  { %v1222_v15 = vadd.f32 %v3529_v19, %v1221_v39 }
 0x393   :  { %v1291_v18 = vmul.f32 %v3533_v44, %v1227_v31 }
 0x394   :  { %v3522_v42 = vpop.f32.mrb[46].mxu0  ;;  %v1290_v27 = vmul.f32 %v3533_v44, %v1222_v15 }
 0x395   :  { %v3524_v43 = vpop.f32.mrb[47].mxu0  ;;  %v1237_v21 = vadd.f32 %v3522_v42, %v3529_v19 }
 0x396   :  { %v1232_v28 = vadd.f32 %v3529_v19, %v3524_v43  ;;  %v1259_v43 = vld [vmem:[%s3803_s17] sm:$0xff]  ;;  %v1260_v19 = vld [vmem:[%s3803_s17 + $0x8] sm:$0xff] }
 0x397   :  { %v1293_v20 = vmul.f32 %v3533_v44, %v1237_v21  ;;  %v2689_v32 = vpack.c.bf16 %v1260_v19, %v1259_v43 }
 0x398   :  { %v1292_v39 = vmul.f32 %v3533_v44, %v1232_v28  ;;  %v1261_v44 = vld [vmem:[%s3803_s17 + $0x10] sm:$0xff] }
 0x399   :  { %2690 = vmatprep.subr.bf16.mxu0 %v2689_v32  ;;  %2721 = vmatprep.subr.bf16.mxu1 %v2689_v32 }
 0x39a   :  { %2692 = vmatpush3.bf16.msra.mxu0 %v2689_v32 }
 0x436   :  { %v2307_v22 = vpop.f32.mrb[16].mxu1 }
 0x437   :  { %v1295_v40 = vadd.f32 %v2307_v22, %v1279_v45  ;;  %v993_v33 = vpop.f32.mrb[17].mxu1  ;;  %v1263_v22 = vld [vmem:[%s3803_s17 + $0x20] sm:$0xff] }
 0x438   :  { %v1294_v48 = vadd.f32 %v1278_v46, %v993_v33  ;;  %v1262_v46 = vld [vmem:[%s3803_s17 + $0x18] sm:$0xff] }
 0x439   :  { %v2693_v23 = vpack.c.bf16 %v1262_v46, %v1261_v44 }
 0x43a   :  { %v2310_v53 = vpop.f32.mrb[18].mxu1  ;;  %2417 = vmatprep.mubr.f32.mxu1 %v1294_v48 }
 0x43b   :  { %v1297_v54 = vadd.f32 %v2310_v53, %v1281_v41  ;;  %v1003_v55 = vpop.f32.mrb[19].mxu1  ;;  %2418 = vmatmul.mubr.f32.vlgmr.msra.gmra.mrb[32].mxu1 %v1295_v40  ;;  %2694 = vmatprep.subr.bf16.mxu0 %v2693_v23  ;;  %v1264_v40 = vld [vmem:[%s3803_s17 + $0x28] sm:$0xff]  ;;  %v1265_v41 = vld [vmem:[%s3803_s17 + $0x30] sm:$0xff] }
 0x43c   :  { %v1296_v60 = vadd.f32 %v1280_v47, %v1003_v55  ;;  %2729 = vmatpush3.bf16.msra.mxu1 %v2689_v32  ;;  %2696 = vmatpush3.bf16.msra.mxu0 %v2693_v23  ;;  %v2697_v33 = vpack.c.bf16 %v1264_v40, %v1263_v22  ;;  %v2701_v48 = vpack.c.bf16 %v1266_v0, %v1265_v41  ;;  %v1267_v47 = vld [vmem:[%s3803_s17 + $0x40] sm:$0xff]  ;;  %v1270_v55 = vld [vmem:[%s3803_s17 + $0x58] sm:$0xff] }
 0x43d   :  { %2722 = vmatprep.subr.bf16.mxu1 %v2693_v23  ;;  %v2705_v53 = vpack.c.bf16 %v1268_v49, %v1267_v47 }
 0x43e   :  { %v2313_v5 = vpop.f32.mrb[20].mxu1  ;;  %2420 = vmatprep.mubr.f32.mxu1 %v1296_v60  ;;  %2698 = vmatprep.subr.bf16.mxu0 %v2697_v33  ;;  %v1272_v60 = vld [vmem:[%s3803_s17 + $0x68] sm:$0xff] }
 0x43f   :  { %v1299_v12 = vadd.f32 %v2313_v5, %v1283_v56  ;;  %v1013_v50 = vpop.f32.mrb[21].mxu1  ;;  %2421 = vmatmul.mubr.f32.gmra.mrb[34].mxu1 %v1297_v54  ;;  %v1269_v54 = vld [vmem:[%s3803_s17 + $0x50] sm:$0xff]  ;;  %v2713_v63 = vpack.c.bf16 %v1272_v60, %v1271_v58  ;;  %v1274_v5 = vld [vmem:[%s3803_s17 + $0x78] sm:$0xff] }
 0x440   :  { %v1298_v59 = vadd.f32 %v1282_v62, %v1013_v50  ;;  %2730 = vmatpush3.bf16.msra.mxu1 %v2693_v23  ;;  %2700 = vmatpush3.bf16.msra.mxu0 %v2697_v33  ;;  %v2709_v56 = vpack.c.bf16 %v1270_v55, %v1269_v54  ;;  %v1273_v62 = vld [vmem:[%s3803_s17 + $0x70] sm:$0xff]  ;;  %v1877_v50 = vld [vmem:[%s3800_s14] ss:$0 sm:$0xff] }
 0x441   :  { %2723 = vmatprep.subr.bf16.mxu1 %v2697_v33  ;;  %2702 = vmatprep.subr.bf16.mxu0 %v2701_v48 }
 0x442   :  { %v2316_v1 = vpop.f32.mrb[22].mxu1  ;;  %2423 = vmatprep.mubr.f32.mxu1 %v1298_v59 }
 0x443   :  { %v1301_v2 = vadd.f32 %v2316_v1, %v1285_v61  ;;  %v1023_v4 = vpop.f32.mrb[23].mxu1  ;;  %2424 = vmatmul.mubr.f32.gmra.mrb[36].mxu1 %v1299_v12  ;;  %v2717_v12 = vpack.c.bf16 %v1274_v5, %v1273_v62 }
 0x444   :  { %v1300_v10 = vadd.f32 %v1284_v9, %v1023_v4  ;;  %2731 = vmatpush3.bf16.msra.mxu1 %v2697_v33  ;;  %2704 = vmatpush3.bf16.msra.mxu0 %v2701_v48 }
 0x445   :  { %2724 = vmatprep.subr.bf16.mxu1 %v2701_v48  ;;  %2706 = vmatprep.subr.bf16.mxu0 %v2705_v53 }
 0x446   :  { %v2319_v14 = vpop.f32.mrb[24].mxu1  ;;  %2426 = vmatprep.mubr.f32.mxu1 %v1300_v10 }
 0x447   :  { %v1303_v24 = vadd.f32 %v2319_v14, %v1287_v6  ;;  %v1033_v25 = vpop.f32.mrb[25].mxu1  ;;  %2427 = vmatmul.mubr.f32.gmra.mrb[38].mxu1 %v1301_v2 }
 0x448   :  { %v1302_v36 = vadd.f32 %v1286_v11, %v1033_v25  ;;  %2732 = vmatpush3.bf16.msra.mxu1 %v2701_v48  ;;  %2708 = vmatpush3.bf16.msra.mxu0 %v2705_v53 }
 0x449   :  { %2725 = vmatprep.subr.bf16.mxu1 %v2705_v53  ;;  %2710 = vmatprep.subr.bf16.mxu0 %v2709_v56 }
 0x44a   :  { %v2322_v52 = vpop.f32.mrb[26].mxu1  ;;  %2429 = vmatprep.mubr.f32.mxu1 %v1302_v36 }
 0x44b   :  { %v1305_v16 = vadd.f32 %v2322_v52, %v1289_v30  ;;  %v1043_v17 = vpop.f32.mrb[27].mxu1  ;;  %2430 = vmatmul.mubr.f32.gmra.mrb[40].mxu1 %v1303_v24 }
 0x44c   :  { %v1304_v26 = vadd.f32 %v1288_v37, %v1043_v17  ;;  %2733 = vmatpush3.bf16.msra.mxu1 %v2705_v53  ;;  %2712 = vmatpush3.bf16.msra.mxu0 %v2709_v56 }
 0x44d   :  { %2726 = vmatprep.subr.bf16.mxu1 %v2709_v56  ;;  %2714 = vmatprep.subr.bf16.mxu0 %v2713_v63 }
 0x44e   :  { %v2325_v34 = vpop.f32.mrb[28].mxu1  ;;  %2432 = vmatprep.mubr.f32.mxu1 %v1304_v26 }
 0x44f   :  { %v1307_v3 = vadd.f32 %v2325_v34, %v1291_v18  ;;  %v1053_v35 = vpop.f32.mrb[29].mxu1  ;;  %2433 = vmatmul.mubr.f32.gmra.mrb[42].mxu1 %v1305_v16 }
 0x450   :  { %v1306_v38 = vadd.f32 %v1290_v27, %v1053_v35  ;;  %2734 = vmatpush3.bf16.msra.mxu1 %v2709_v56  ;;  %2716 = vmatpush3.bf16.msra.mxu0 %v2713_v63 }
 0x451   :  { %2727 = vmatprep.subr.bf16.mxu1 %v2713_v63  ;;  %2718 = vmatprep.subr.bf16.mxu0 %v2717_v12 }
 0x452   :  { %v2328_v29 = vpop.f32.mrb[30].mxu1  ;;  %2435 = vmatprep.mubr.f32.mxu1 %v1306_v38 }
 0x453   :  { %v1309_v57 = vadd.f32 %v2328_v29, %v1293_v20  ;;  %v1063_v42 = vpop.f32.mrb[31].mxu1  ;;  %2436 = vmatmul.mubr.f32.gmra.mrb[44].mxu1 %v1307_v3 }
 0x454   :  { %v1308_v45 = vadd.f32 %v1292_v39, %v1063_v42  ;;  %2735 = vmatpush3.bf16.msra.mxu1 %v2713_v63  ;;  %2720 = vmatpush3.bf16.msra.mxu0 %v2717_v12 }
 0x455   :  { %2728 = vmatprep.subr.bf16.mxu1 %v2717_v12 }
 0x456   :  { %2438 = vmatprep.mubr.f32.mxu1 %v1308_v45 }
 0x457   :  { %2439 = vmatmul.mubr.f32.gmra.mrb[46].mxu1 %v1309_v57 }
 0x458   :  { %2736 = vmatpush3.bf16.msra.mxu1 %v2717_v12 }
 0x50e   :  { %v2419_v61 = vpop.f32.mrb[32].mxu1 }
 0x50f   :  { %v3618_v51 = vadd.f32 %v2419_v61, %v1877_v50  ;;  %v1382_v59 = vpop.f32.mrb[33].mxu1 }
 0x510   :  { %v3620_v9 = vadd.f32 %v1877_v50, %v1382_v59 }
 0x512   :  { %v1525_v8 = vadd.f32 %v3618_v51, %v3620_v9  ;;  %v2422_v1 = vpop.f32.mrb[34].mxu1 }
 0x513   :  { %v3624_v2 = vadd.f32 %v2422_v1, %v1877_v50  ;;  %v1392_v4 = vpop.f32.mrb[35].mxu1 }
 0x514   :  { %v1393_v6 = vadd.f32 %v1877_v50, %v1392_v4 }
 0x515   :  { %v1512_v7 = vmul.f32 0.0, %v3624_v2 }
 0x516   :  { %v1526_v10 = vadd.f32 %v1525_v8, %v1393_v6  ;;  %v2425_v11 = vpop.f32.mrb[36].mxu1 }
 0x517   :  { %v1402_v13 = vpop.f32.mrb[37].mxu1  ;;  %v1408_v24 = vadd.f32 %v2425_v11, %v1877_v50 }
 0x518   :  { %v1527_v14 = vadd.f32 %v1526_v10, %v1512_v7  ;;  %v1403_v25 = vadd.f32 %v1877_v50, %v1402_v13 }
 0x519   :  { %v1514_v37 = vmul.f32 0.0, %v1408_v24 }
 0x51a   :  { %v1513_v30 = vmul.f32 0.0, %v1403_v25  ;;  %v2428_v31 = vpop.f32.mrb[38].mxu1 }
 0x51b   :  { %v1412_v36 = vpop.f32.mrb[39].mxu1  ;;  %v1418_v52 = vadd.f32 %v2428_v31, %v1877_v50 }
 0x51c   :  { %v1528_v15 = vadd.f32 %v1527_v14, %v1513_v30  ;;  %v1413_v16 = vadd.f32 %v1877_v50, %v1412_v36 }
 0x51d   :  { %v1516_v27 = vmul.f32 0.0, %v1418_v52 }
 0x51e   :  { %v1515_v17 = vmul.f32 0.0, %v1413_v16  ;;  %v1529_v18 = vadd.f32 %v1528_v15, %v1514_v37  ;;  %v2431_v21 = vpop.f32.mrb[40].mxu1 }
 0x51f   :  { %v1422_v26 = vpop.f32.mrb[41].mxu1  ;;  %v1428_v34 = vadd.f32 %v2431_v21, %v1877_v50 }
 0x520   :  { %v1530_v28 = vadd.f32 %v1529_v18, %v1515_v17  ;;  %v1423_v3 = vadd.f32 %v1877_v50, %v1422_v26 }
 0x521   :  { %v1518_v29 = vmul.f32 0.0, %v1428_v34 }
 0x522   :  { %v1517_v35 = vmul.f32 0.0, %v1423_v3  ;;  %v1531_v20 = vadd.f32 %v1530_v28, %v1516_v27  ;;  %v2434_v38 = vpop.f32.mrb[42].mxu1 }
 0x523   :  { %v1432_v39 = vpop.f32.mrb[43].mxu1  ;;  %v1438_v42 = vadd.f32 %v2434_v38, %v1877_v50 }
 0x524   :  { %v1532_v57 = vadd.f32 %v1531_v20, %v1517_v35  ;;  %v1433_v45 = vadd.f32 %v1877_v50, %v1432_v39 }
 0x525   :  { %v1520_v46 = vmul.f32 0.0, %v1438_v42 }
 0x526   :  { %v1519_v43 = vmul.f32 0.0, %v1433_v45  ;;  %v1533_v19 = vadd.f32 %v1532_v57, %v1518_v29  ;;  %v2437_v32 = vpop.f32.mrb[44].mxu1 }
 0x527   :  { %v1442_v44 = vpop.f32.mrb[45].mxu1  ;;  %v1448_v22 = vadd.f32 %v2437_v32, %v1877_v50 }
 0x528   :  { %v1534_v23 = vadd.f32 %v1533_v19, %v1519_v43  ;;  %v1443_v40 = vadd.f32 %v1877_v50, %v1442_v44 }
 0x529   :  { %v1522_v47 = vmul.f32 0.0, %v1448_v22 }
 0x52a   :  { %v1521_v33 = vmul.f32 0.0, %v1443_v40  ;;  %v1535_v41 = vadd.f32 %v1534_v23, %v1520_v46  ;;  %v2440_v0 = vpop.f32.mrb[46].mxu1 }
 0x52b   :  { %v1452_v48 = vpop.f32.mrb[47].mxu1  ;;  %v1458_v53 = vadd.f32 %v2440_v0, %v1877_v50 }
 0x52c   :  { %v1536_v49 = vadd.f32 %v1535_v41, %v1521_v33  ;;  %v1453_v54 = vadd.f32 %v1877_v50, %v1452_v48 }
 0x52d   :  { %v1524_v58 = vmul.f32 0.0, %v1458_v53 }
 0x52e   :  { %v1523_v55 = vmul.f32 0.0, %v1453_v54  ;;  %v1537_v56 = vadd.f32 %v1536_v49, %v1522_v47 }
 0x530   :  { %v1538_v60 = vadd.f32 %v1537_v56, %v1523_v55 }
 0x532   :  { %v1539_v62 = vadd.f32 %v1538_v60, %v1524_v58 }
 0x534   :  { %v1540_v63 = vrot.slane %v1539_v62, 4 }
 0x536   :  { %v1541_v5 = vadd.f32 %v1540_v63, %v1539_v62 }
 0x538   :  { %v1542_v12 = vrot.slane %v1541_v5, 2 }
 0x53a   :  { %v1543_v61 = vadd.f32 %v1542_v12, %v1541_v5 }
 0x53c   :  { %v1544_v59 = vrot.slane %v1543_v61, 1 }
 0x53e   :  { %v1545_v8 = vadd.f32 %v1544_v59, %v1543_v61 }
 0x540   :  { %v1546_v1 = vmul.f32 0.041666668, %v1545_v8 }
 0x542   :  { %v3628_v4 = vsub.f32 %v3620_v9, %v1546_v1  ;;  %v3631_v7 = vsub.f32 %v3618_v51, %v1546_v1  ;;  %v3633_v10 = vsub.f32 %v1393_v6, %v1546_v1  ;;  %v3636_v50 = vsub.f32 %v3624_v2, %v1546_v1 }
 0x543   :  { %v3638_v11 = vsub.f32 %v1403_v25, %v1546_v1  ;;  %v3640_v13 = vsub.f32 %v1408_v24, %v1546_v1  ;;  %v3642_v14 = vsub.f32 %v1413_v16, %v1546_v1  ;;  %v3644_v30 = vsub.f32 %v1418_v52, %v1546_v1 }
 0x544   :  { %v3646_v31 = vsub.f32 %v1423_v3, %v1546_v1  ;;  %v3648_v9 = vsub.f32 %v1428_v34, %v1546_v1  ;;  %v3650_v36 = vsub.f32 %v1433_v45, %v1546_v1  ;;  %v3652_v51 = vsub.f32 %v1438_v42, %v1546_v1 }
 0x545   :  { %v3654_v6 = vsub.f32 %v1443_v40, %v1546_v1  ;;  %v3656_v2 = vsub.f32 %v1448_v22, %v1546_v1  ;;  %v1561_v25 = vsub.f32 %v1453_v54, %v1546_v1  ;;  %v3658_v37 = vsub.f32 %v1458_v53, %v1546_v1 }
 0x546   :  { %v1579_v24 = vmul.f32 %v3628_v4, %v3628_v4  ;;  %v1580_v15 = vmul.f32 %v3631_v7, %v3631_v7  ;;  %v1566_v52 = vmul.f32 0.0, %v3636_v50  ;;  %v1567_v16 = vmul.f32 0.0, %v3638_v11 }
 0x547   :  { %v1581_v17 = vmul.f32 %v3633_v10, %v3633_v10  ;;  %v1568_v21 = vmul.f32 0.0, %v3640_v13  ;;  %v1569_v28 = vmul.f32 0.0, %v3642_v14  ;;  %v1570_v35 = vmul.f32 0.0, %v3644_v30 }
 0x548   :  { %v1595_v18 = vadd.f32 %v1580_v15, %v1579_v24  ;;  %v1582_v26 = vmul.f32 %v1566_v52, %v1566_v52  ;;  %v1583_v34 = vmul.f32 %v1567_v16, %v1567_v16  ;;  %v1571_v39 = vmul.f32 0.0, %v3646_v31 }
 0x549   :  { %v1584_v20 = vmul.f32 %v1568_v21, %v1568_v21  ;;  %v1585_v29 = vmul.f32 %v1569_v28, %v1569_v28  ;;  %v1572_v42 = vmul.f32 0.0, %v3648_v9  ;;  %v1586_v45 = vmul.f32 %v1570_v35, %v1570_v35 }
 0x54a   :  { %v1596_v27 = vadd.f32 %v1595_v18, %v1581_v17  ;;  %v1573_v19 = vmul.f32 0.0, %v3650_v36  ;;  %v1587_v32 = vmul.f32 %v1571_v39, %v1571_v39  ;;  %v1574_v46 = vmul.f32 0.0, %v3652_v51  ;;  %v3681_v18 = vld [vmem:[%s3801_s15] ss:$0 sm:$0xff] }
 0x54b   :  { %v1588_v23 = vmul.f32 %v1572_v42, %v1572_v42  ;;  %v1575_v40 = vmul.f32 0.0, %v3654_v6  ;;  %v1576_v0 = vmul.f32 0.0, %v3656_v2  ;;  %v1577_v49 = vmul.f32 0.0, %v1561_v25 }
 0x54c   :  { %v1597_v3 = vadd.f32 %v1596_v27, %v1582_v26  ;;  %v1589_v33 = vmul.f32 %v1573_v19, %v1573_v19  ;;  %v1590_v48 = vmul.f32 %v1574_v46, %v1574_v46  ;;  %v1578_v55 = vmul.f32 0.0, %v3658_v37 }
 0x54d   :  { %v1591_v53 = vmul.f32 %v1575_v40, %v1575_v40  ;;  %v1592_v56 = vmul.f32 %v1576_v0, %v1576_v0  ;;  %v1593_v60 = vmul.f32 %v1577_v49, %v1577_v49 }
 0x54e   :  { %v1598_v38 = vadd.f32 %v1597_v3, %v1583_v34  ;;  %v1594_v63 = vmul.f32 %v1578_v55, %v1578_v55  ;;  %v3689_v34 = vld [vmem:[%s3802_s16] ss:$0 sm:$0xff] }
 0x550   :  { %v1599_v57 = vadd.f32 %v1598_v38, %v1584_v20 }
 0x552   :  { %v1600_v43 = vadd.f32 %v1599_v57, %v1585_v29 }
 0x554   :  { %v1601_v44 = vadd.f32 %v1600_v43, %v1586_v45 }
 0x556   :  { %v1602_v22 = vadd.f32 %v1601_v44, %v1587_v32 }
 0x558   :  { %v1603_v41 = vadd.f32 %v1602_v22, %v1588_v23 }
 0x55a   :  { %v1604_v47 = vadd.f32 %v1603_v41, %v1589_v33 }
 0x55c   :  { %v1605_v54 = vadd.f32 %v1604_v47, %v1590_v48 }
 0x55e   :  { %v1606_v58 = vadd.f32 %v1605_v54, %v1591_v53 }
 0x560   :  { %v1607_v62 = vadd.f32 %v1606_v58, %v1592_v56 }
 0x562   :  { %v1608_v5 = vadd.f32 %v1607_v62, %v1593_v60 }
 0x564   :  { %v1609_v12 = vadd.f32 %v1608_v5, %v1594_v63 }
 0x566   :  { %v1610_v61 = vrot.slane %v1609_v12, 4 }
 0x568   :  { %v1611_v59 = vadd.f32 %v1610_v61, %v1609_v12 }
 0x56a   :  { %v1612_v8 = vrot.slane %v1611_v59, 2 }
 0x56c   :  { %v1613_v1 = vadd.f32 %v1612_v8, %v1611_v59 }
 0x56e   :  { %v1614_v24 = vrot.slane %v1613_v1, 1 }
 0x570   :  { %v1615_v15 = vadd.f32 %v1614_v24, %v1613_v1 }
 0x572   :  { %v1616_v52 = vmul.f32 0.041666668, %v1615_v15 }
 0x574   :  { %v1617_v16 = vadd.f32 1e-05, %v1616_v52 }
 0x576   :  { %2740 = vrsqrt.f32 %v1617_v16 }
 0x580   :  { %v2741_v17 = vpop.eup %2740 }
 0x581   :  { %v1633_v21 = vmul.f32 %v2741_v17, %v1561_v25  ;;  %v1619_v26 = vmul.f32 %v2741_v17, %v3628_v4  ;;  %v1627_v27 = vmul.f32 %v2741_v17, %v3646_v31  ;;  %v1620_v28 = vmul.f32 %v2741_v17, %v3631_v7 }
 0x582   :  { %v1628_v3 = vmul.f32 %v2741_v17, %v3648_v9  ;;  %v1621_v35 = vmul.f32 %v2741_v17, %v3633_v10  ;;  %v1629_v20 = vmul.f32 %v2741_v17, %v3650_v36  ;;  %v1622_v38 = vmul.f32 %v2741_v17, %v3636_v50 }
 0x583   :  { %v1641_v25 = vmul.f32 %v3681_v18, %v1619_v26  ;;  %v1649_v4 = vmul.f32 %v3681_v18, %v1627_v27  ;;  %v1642_v31 = vmul.f32 %v3681_v18, %v1620_v28  ;;  %v1630_v7 = vmul.f32 %v2741_v17, %v3652_v51 }
 0x584   :  { %v1650_v39 = vmul.f32 %v3681_v18, %v1628_v3  ;;  %v1643_v29 = vmul.f32 %v3681_v18, %v1621_v35  ;;  %v1651_v9 = vmul.f32 %v3681_v18, %v1629_v20  ;;  %v1644_v10 = vmul.f32 %v3681_v18, %v1622_v38 }
 0x585   :  { %v1663_v36 = vadd.f32 %v3689_v34, %v1641_v25  ;;  %v1671_v50 = vadd.f32 %v3689_v34, %v1649_v4  ;;  %v1664_v57 = vadd.f32 %v3689_v34, %v1642_v31  ;;  %v1652_v42 = vmul.f32 %v3681_v18, %v1630_v7 }
 0x586   :  { %v1672_v45 = vadd.f32 %v3689_v34, %v1650_v39  ;;  %v1665_v51 = vadd.f32 %v3689_v34, %v1643_v29  ;;  %v1673_v43 = vadd.f32 %v3689_v34, %v1651_v9  ;;  %v1666_v19 = vadd.f32 %v3689_v34, %v1644_v10 }
 0x587   :  { %v1679_v32 = vmax.f32 %v1663_v36, 0.0  ;;  %v1687_v44 = vmax.f32 %v1671_v50, 0.0  ;;  %v1680_v46 = vmax.f32 %v1664_v57, 0.0  ;;  %v1674_v23 = vadd.f32 %v3689_v34, %v1652_v42 }
 0x588   :  { %v1688_v22 = vmax.f32 %v1672_v45, 0.0  ;;  %v1681_v40 = vmax.f32 %v1665_v51, 0.0  ;;  %v1689_v33 = vmax.f32 %v1673_v43, 0.0  ;;  %v1623_v41 = vmul.f32 %v2741_v17, %v3638_v11 }
 0x589   :  { %2473 = vmatprep.mubr.f32.mxu0 %v1679_v32  ;;  %2485 = vmatprep.mubr.f32.mxu1 %v1687_v44  ;;  %v1631_v0 = vmul.f32 %v2741_v17, %v3654_v6  ;;  %v1624_v48 = vmul.f32 %v2741_v17, %v3640_v13  ;;  %v1682_v47 = vmax.f32 %v1666_v19, 0.0  ;;  %v1632_v49 = vmul.f32 %v2741_v17, %v3656_v2 }
 0x58a   :  { %2474 = vmatmul.mubr.f32.vlgmr.msra.gmra.mrb[48].mxu0 %v1680_v46  ;;  %2486 = vmatmul.mubr.f32.vlgmr.msra.gmra.mrb[48].mxu1 %v1688_v22  ;;  %v1625_v53 = vmul.f32 %v2741_v17, %v3642_v14  ;;  %v1655_v54 = vmul.f32 %v3681_v18, %v1633_v21  ;;  %v1690_v55 = vmax.f32 %v1674_v23, 0.0  ;;  %v1645_v56 = vmul.f32 %v3681_v18, %v1623_v41 }
 0x58b   :  { %2476 = vmatprep.mubr.f32.mxu0 %v1681_v40  ;;  %2488 = vmatprep.mubr.f32.mxu1 %v1689_v33  ;;  %v1653_v11 = vmul.f32 %v3681_v18, %v1631_v0  ;;  %v1646_v6 = vmul.f32 %v3681_v18, %v1624_v48  ;;  %v1654_v13 = vmul.f32 %v3681_v18, %v1632_v49 }
 0x58c   :  { %v1647_v58 = vmul.f32 %v3681_v18, %v1625_v53  ;;  %v1677_v60 = vadd.f32 %v3689_v34, %v1655_v54  ;;  %v1626_v2 = vmul.f32 %v2741_v17, %v3644_v30  ;;  %v1667_v14 = vadd.f32 %v3689_v34, %v1645_v56 }
 0x58d   :  { %v1675_v62 = vadd.f32 %v3689_v34, %v1653_v11  ;;  %v1668_v63 = vadd.f32 %v3689_v34, %v1646_v6  ;;  %v1634_v5 = vmul.f32 %v2741_v17, %v3658_v37  ;;  %v1676_v12 = vadd.f32 %v3689_v34, %v1654_v13 }
 0x58e   :  { %2477 = vmatmul.mubr.f32.gmra.mrb[50].mxu0 %v1682_v47  ;;  %2489 = vmatmul.mubr.f32.gmra.mrb[50].mxu1 %v1690_v55  ;;  %v1669_v61 = vadd.f32 %v3689_v34, %v1647_v58  ;;  %v1648_v59 = vmul.f32 %v3681_v18, %v1626_v2  ;;  %v1683_v8 = vmax.f32 %v1667_v14, 0.0  ;;  %v1693_v37 = vmax.f32 %v1677_v60, 0.0 }
 0x58f   :  { %v1691_v1 = vmax.f32 %v1675_v62, 0.0  ;;  %v1656_v30 = vmul.f32 %v3681_v18, %v1634_v5  ;;  %v1684_v24 = vmax.f32 %v1668_v63, 0.0  ;;  %v1692_v15 = vmax.f32 %v1676_v12, 0.0  ;;  %v1880_v18 = vld [vmem:[%s3804_s18] ss:$0 sm:$0xff] }
 0x590   :  { %v1670_v52 = vadd.f32 %v3689_v34, %v1648_v59  ;;  %2479 = vmatprep.mubr.f32.mxu0 %v1683_v8  ;;  %v1685_v16 = vmax.f32 %v1669_v61, 0.0 }
 0x591   :  { %2491 = vmatprep.mubr.f32.mxu1 %v1691_v1  ;;  %v1678_v17 = vadd.f32 %v3689_v34, %v1656_v30 }
 0x592   :  { %2480 = vmatmul.mubr.f32.gmra.mrb[52].mxu0 %v1684_v24  ;;  %2492 = vmatmul.mubr.f32.gmra.mrb[52].mxu1 %v1692_v15  ;;  %v1686_v21 = vmax.f32 %v1670_v52, 0.0 }
 0x593   :  { %2482 = vmatprep.mubr.f32.mxu0 %v1685_v16  ;;  %2494 = vmatprep.mubr.f32.mxu1 %v1693_v37  ;;  %v1694_v26 = vmax.f32 %v1678_v17, 0.0 }
 0x596   :  { %2483 = vmatmul.mubr.f32.gmra.mrb[54].mxu0 %v1686_v21  ;;  %2495 = vmatmul.mubr.f32.gmra.mrb[54].mxu1 %v1694_v26 }
 0x65d   :  { %v2475_v27 = vpop.f32.mrb[48].mxu0  ;;  %v2487_v28 = vpop.f32.mrb[48].mxu1 }
 0x65e   :  { %v1773_v3 = vadd.f32 %v2475_v27, %v1880_v18  ;;  %v1813_v35 = vadd.f32 %v2487_v28, %v1880_v18  ;;  %v1767_v20 = vpop.f32.mrb[49].mxu0  ;;  %v1807_v38 = vpop.f32.mrb[49].mxu1 }
 0x65f   :  { %v1768_v25 = vadd.f32 %v1880_v18, %v1767_v20  ;;  %v1808_v34 = vadd.f32 %v1880_v18, %v1807_v38 }
 0x660   :  { %1847 = vst [vmem:[%s3805_s19 + $0x8] sm:$0xff] %v1773_v3  ;;  %1855 = vst [vmem:[%s3805_s19 + $0x48] sm:$0xff] %v1813_v35 }
 0x661   :  { %1846 = vst [vmem:[%s3805_s19] sm:$0xff] %v1768_v25  ;;  %1854 = vst [vmem:[%s3805_s19 + $0x40] sm:$0xff] %v1808_v34  ;;  %v2478_v4 = vpop.f32.mrb[50].mxu0  ;;  %v2490_v31 = vpop.f32.mrb[50].mxu1 }
 0x662   :  { %v1783_v7 = vadd.f32 %v2478_v4, %v1880_v18  ;;  %v1823_v39 = vadd.f32 %v2490_v31, %v1880_v18  ;;  %v1777_v29 = vpop.f32.mrb[51].mxu0  ;;  %v1817_v9 = vpop.f32.mrb[51].mxu1 }
 0x663   :  { %v1778_v10 = vadd.f32 %v1880_v18, %v1777_v29  ;;  %v1818_v36 = vadd.f32 %v1880_v18, %v1817_v9 }
 0x664   :  { %1849 = vst [vmem:[%s3805_s19 + $0x18] sm:$0xff] %v1783_v7  ;;  %1857 = vst [vmem:[%s3805_s19 + $0x58] sm:$0xff] %v1823_v39 }
 0x665   :  { %1848 = vst [vmem:[%s3805_s19 + $0x10] sm:$0xff] %v1778_v10  ;;  %1856 = vst [vmem:[%s3805_s19 + $0x50] sm:$0xff] %v1818_v36  ;;  %v2481_v50 = vpop.f32.mrb[52].mxu0  ;;  %v2493_v57 = vpop.f32.mrb[52].mxu1 }
 0x666   :  { %v1793_v42 = vadd.f32 %v2481_v50, %v1880_v18  ;;  %v1833_v45 = vadd.f32 %v2493_v57, %v1880_v18  ;;  %v1787_v51 = vpop.f32.mrb[53].mxu0  ;;  %v1827_v43 = vpop.f32.mrb[53].mxu1 }
 0x667   :  { %v1788_v19 = vadd.f32 %v1880_v18, %v1787_v51  ;;  %v1828_v32 = vadd.f32 %v1880_v18, %v1827_v43 }
 0x668   :  { %1851 = vst [vmem:[%s3805_s19 + $0x28] sm:$0xff] %v1793_v42  ;;  %1859 = vst [vmem:[%s3805_s19 + $0x68] sm:$0xff] %v1833_v45 }
 0x669   :  { %1850 = vst [vmem:[%s3805_s19 + $0x20] sm:$0xff] %v1788_v19  ;;  %1858 = vst [vmem:[%s3805_s19 + $0x60] sm:$0xff] %v1828_v32  ;;  %v2484_v44 = vpop.f32.mrb[54].mxu0  ;;  %v2496_v46 = vpop.f32.mrb[54].mxu1 }
 0x66a   :  { %v1803_v23 = vadd.f32 %v2484_v44, %v1880_v18  ;;  %v1843_v22 = vadd.f32 %v2496_v46, %v1880_v18  ;;  %v1797_v40 = vpop.f32.mrb[55].mxu0  ;;  %v1837_v33 = vpop.f32.mrb[55].mxu1 }
 0x66b   :  { %v1798_v41 = vadd.f32 %v1880_v18, %v1797_v40  ;;  %v1838_v0 = vadd.f32 %v1880_v18, %v1837_v33 }
 0x66c   :  { %1853 = vst [vmem:[%s3805_s19 + $0x38] sm:$0xff] %v1803_v23  ;;  %1861 = vst [vmem:[%s3805_s19 + $0x78] sm:$0xff] %v1843_v22 }
 0x66d   :  { %1852 = vst [vmem:[%s3805_s19 + $0x30] sm:$0xff] %v1798_v41  ;;  %1860 = vst [vmem:[%s3805_s19 + $0x70] sm:$0xff] %v1838_v0 }
 0x66e   :  { %1870 = vsyncpa [#allocation3], 1 }

</bundles_post_ra>
